<compile_context>
chip_gen: v6e
topology: v6e:2x2x1
jax: 0.10.0
libtpu: 0.0.40
codegen_flags: <defaults>
</compile_context>

<pallas_src>
import functools

import jax
import jax.numpy as jnp
import numpy as np
from jax import lax
from jax.experimental import pallas as pl
from jax.experimental.pallas import tpu as pltpu


# ----------------------------- hyper-parameters ------------------------------
class Params:
    vocab_size_words = 100
    embed_size_words = 16
    vocab_size_pos = 20
    embed_size_pos = 16
    bilstm_hidden_size = 32
    bilstm_num_layers = 2
    bilstm_dropout = 0.0          # eval: dropout is identity
    linear_hidden_sizes = [32]
    linear_dropout = 0.0          # eval: dropout is identity
    vocab_size_tag = 9


OUT_PAD = 128                      # lane-dense logits (sliced to n_tags outside)
_GATE_SRC = (0, 1, 3, 2)           # packed groups (i, f, o, g) <- raw (i, f, g, o)


def _round_up(x, m):
    return (x + m - 1) // m * m


# ------------------------------ weight packing --------------------------------
def pack_params(P, p):
    """One-time host-side packing (run OUTSIDE jit) into three VMEM slabs.

    Returns (packed arrays, static meta).  Packed gate-group order is
    (i, f, o, g); within each 2H-wide group the lanes are [fwd H | bwd H].
    The 0.5 of sigmoid(x)=0.5*tanh(0.5x)+0.5 is folded into the i/f/o columns.
    """
    H = p.bilstm_hidden_size
    H2, H6, H8 = 2 * H, 6 * H, 8 * H
    Ew = p.embed_size_words
    n_layers = p.bilstm_num_layers
    n_tags = p.vocab_size_tag

    def _f32(a):
        return np.asarray(a, np.float32)

    scale = np.ones((H8,), np.float32)
    scale[:H6] = 0.5                            # i/f/o gate columns

    def merge_cols(wf, wb):
        """(d,4H)x2 raw (i,f,g,o) -> dense (d,8H) packed (i,f,o,g), [fwd|bwd]."""
        wf, wb = _f32(wf), _f32(wb)
        out = np.zeros((wf.shape[0], H8), np.float32)
        for k, g in enumerate(_GATE_SRC):
            out[:, 2 * k * H: 2 * k * H + H] = wf[:, g * H:(g + 1) * H]
            out[:, 2 * k * H + H: 2 * (k + 1) * H] = wb[:, g * H:(g + 1) * H]
        return out

    def blockdiag(whf, whb):
        """(H,4H)x2 -> (2H,8H) block-diagonal hidden->gate weight for [h_f|h_b]."""
        whf, whb = _f32(whf), _f32(whb)
        out = np.zeros((H2, H8), np.float32)
        for k, g in enumerate(_GATE_SRC):
            out[:H, 2 * k * H: 2 * k * H + H] = whf[:, g * H:(g + 1) * H]
            out[H:, 2 * k * H + H: 2 * (k + 1) * H] = whb[:, g * H:(g + 1) * H]
        return out

    # layer 0: fold embeddings + input projection + bias into ONE gather table.
    wih_f0, _, b_f0 = P["lstm"][0]["fwd"]
    wih_b0, _, b_b0 = P["lstm"][0]["bwd"]
    w_in0 = merge_cols(wih_f0, wih_b0)                       # (D0, 8H)
    bias0 = merge_cols(_f32(b_f0)[None, :], _f32(b_b0)[None, :])
    Mw = _f32(P["embed_words"]) @ w_in0[:Ew]                 # (Vw, 8H)
    Mp = _f32(P["embed_pos"]) @ w_in0[Ew:] + bias0           # (Vp, 8H)
    Vw, Vp = Mw.shape[0], Mp.shape[0]
    emb_rows = _round_up(Vw + Vp, 128)
    emb_proj = np.zeros((emb_rows, H8), np.float32)
    emb_proj[:Vw] = Mw
    emb_proj[Vw:Vw + Vp] = Mp
    emb_proj *= scale

    # bf16 weight slab (all MXU operands) + f32 bias slab.
    blocks, offs, cur = [], {}, 0

    def add(name, arr):
        nonlocal cur
        r, c = arr.shape
        rp = _round_up(r, 8)
        blk = np.zeros((rp, H8), np.float32)
        blk[:r, :c] = arr
        blocks.append(blk)
        offs[name] = cur
        cur += rp

    brow_list, brows = [], {}

    def addb(name, vec):
        brows[name] = len(brow_list)
        row = np.zeros((H8,), np.float32)
        row[:vec.shape[0]] = vec
        brow_list.append(row)

    for layer in range(n_layers):
        wih_f, whh_f, b_f = P["lstm"][layer]["fwd"]
        wih_b, whh_b, b_b = P["lstm"][layer]["bwd"]
        if layer > 0:
            add(f"w_in{layer}", merge_cols(wih_f, wih_b) * scale)
            addb(f"bias{layer}",
                 (merge_cols(_f32(b_f)[None, :], _f32(b_b)[None, :]) * scale)[0])
        add(f"whh{layer}", blockdiag(whh_f, whh_b) * scale)

    head_meta = []
    din = H2
    for i, (w, b) in enumerate(zip(P["lin_ws"], P["lin_bs"])):
        w = _f32(w)
        if i == 0:
            w = np.concatenate([w, w], axis=0)   # (h_f+h_b)@W == [h_f|h_b]@[W;W]
        add(f"lin{i}", w)
        addb(f"lin_b{i}", _f32(b))
        head_meta.append((offs[f"lin{i}"], din, w.shape[1], brows[f"lin_b{i}"]))
        din = w.shape[1]

    w_out = _f32(P["w_out"])
    if not P["lin_ws"]:
        w_out = np.concatenate([w_out, w_out], axis=0)
        din = H2
    w_out_p = np.zeros((w_out.shape[0], OUT_PAD), np.float32)
    w_out_p[:, :n_tags] = w_out
    add("w_out", w_out_p)
    b_out_p = np.zeros((OUT_PAD,), np.float32)
    b_out_p[:n_tags] = _f32(P["b_out"])
    addb("b_out", b_out_p)

    while len(brow_list) < 8:
        brow_list.append(np.zeros((H8,), np.float32))

    packed = {
        "emb_proj": jnp.asarray(emb_proj),                                  # f32
        "wslab": jnp.asarray(np.concatenate(blocks, 0)).astype(jnp.bfloat16),
        "bslab": jnp.asarray(np.stack(brow_list, 0)),                       # f32
    }
    meta = {
        "H": H,
        "Vw": Vw,
        "emb_rows": emb_rows,
        "n_layers": n_layers,
        "whh_off": tuple(offs[f"whh{l}"] for l in range(n_layers)),
        "w_in_off": tuple(offs.get(f"w_in{l}", -1) for l in range(n_layers)),
        "bias_row": tuple(brows.get(f"bias{l}", -1) for l in range(n_layers)),
        "head": tuple(head_meta),
        "out_off": offs["w_out"],
        "out_din": din,
        "out_brow": brows["b_out"],
    }
    return packed, meta


# ------------------------------ fused kernel ----------------------------------
def _fused_forward_kernel(meta, T, B, Bp, x_sref, emb_ref, wslab_ref, bslab_ref,
                          out_ref, oh_scr):
    """Whole PosRnnNER forward on VMEM-resident data (single invocation).

    x_sref : SMEM (B, 2T) int32 token+pos ids
    emb_ref: VMEM (emb_rows, 8H) f32  rows = E_w @ W_in0 and E_p @ W_in0 + b0
    wslab  : VMEM (rows, 8H) bf16     all MXU weight operands
    bslab  : VMEM (8, 8H) f32         biases
    out_ref: VMEM (T*Bp, 128) f32     lane-dense logits (row = t*Bp + b)
    oh_scr : VMEM (T*Bp, emb_rows) f32  "two-hot" embedding selector
    """
    H = meta["H"]
    H2, H6, H8 = 2 * H, 6 * H, 8 * H
    Vw = meta["Vw"]
    f32, bf16 = jnp.float32, jnp.bfloat16

    # One-time lane masks.
    gate_lane = lax.broadcasted_iota(jnp.int32, (Bp, H8), 1)
    gmod = gate_lane & (H2 - 1) if (H2 & (H2 - 1)) == 0 else gate_lane % H2
    fwd_gate = gmod < H                                      # fwd half of each gate group
    fwd_half = lax.broadcasted_iota(jnp.int32, (Bp, H2), 1) < H

    def bilstm_layer(p, whh):
        """Merged fwd+bwd recurrence; p is the (T*Bp, 8H) pre-projection."""
        hs = [None] * T
        h = c = None
        for t in range(T):
            rt = T - 1 - t                                   # bwd position this step
            pre = jnp.where(fwd_gate, p[t * Bp:(t + 1) * Bp, :],
                            p[rt * Bp:(rt + 1) * Bp, :])
            if t == 0:
                gates = pre                                  # zero initial state
            else:
                # NOTE: if the bundle dump ever shows spills, re-read whh from
                # its ref at the use site instead of the hoisted value.
                gates = pre + jnp.dot(h.astype(bf16), whh,
                                      preferred_element_type=f32)
            # sigmoid(x) = 0.5*tanh(0.5x)+0.5; the 0.5x is folded into weights.
            sig = jnp.tanh(gates[:, :H6]) * 0.5 + 0.5
            i_g = sig[:, 0:H2]
            f_g = sig[:, H2:2 * H2]
            o_g = sig[:, 2 * H2:H6]
            g_g = jnp.tanh(gates[:, H6:])
            c = i_g * g_g if t == 0 else f_g * c + i_g * g_g
            h = o_g * jnp.tanh(c)                            # (Bp, 2H) = [h_f | h_b]
            hs[t] = h
        # Output position t pairs h_f from step t with h_b from step T-1-t.
        return jnp.concatenate(
            [jnp.where(fwd_half, hs[t], hs[T - 1 - t]) for t in range(T)], axis=0)

    # ---- layer 0: the embedding lookup IS the input projection.  Build a
    # two-hot selector (one word hit + one pos hit per real row; padded batch
    # rows stay zero) and hit the constant-folded table with one matmul. ----
    oh_scr[...] = jnp.zeros_like(oh_scr)
    emb_iota = lax.broadcasted_iota(jnp.int32, (1, meta["emb_rows"]), 1)
    for t in range(T):
        for b in range(B):
            iw = x_sref[b, t]
            ip = x_sref[b, T + t] + Vw
            oh_scr[pl.ds(t * Bp + b, 1), :] = (
                (emb_iota == iw) | (emb_iota == ip)).astype(f32)
    p = jnp.dot(oh_scr[...], emb_ref[...], preferred_element_type=f32)  # (N, 8H)

    hseq = None
    for layer in range(meta["n_layers"]):
        if layer > 0:
            o = meta["w_in_off"][layer]
            br = meta["bias_row"][layer]
            p = (jnp.dot(hseq.astype(bf16), wslab_ref[o:o + H2, :],
                         preferred_element_type=f32)
                 + bslab_ref[br:br + 1, :])
        ho = meta["whh_off"][layer]
        hseq = bilstm_layer(p, wslab_ref[ho:ho + H2, :])

    # ---- MLP head: first linear weight is stacked [W; W] so that
    # (h_f + h_b) @ W == hseq @ [W; W]; output padded to 128 lanes. ----
    z = hseq
    for (off, din, dout, brow) in meta["head"]:
        z = jnp.maximum(
            jnp.dot(z.astype(bf16), wslab_ref[off:off + din, 0:dout],
                    preferred_element_type=f32)
            + bslab_ref[brow:brow + 1, 0:dout], 0.0)
    off, din, brow = meta["out_off"], meta["out_din"], meta["out_brow"]
    out_ref[...] = (jnp.dot(z.astype(bf16), wslab_ref[off:off + din, 0:OUT_PAD],
                            preferred_element_type=f32)
                    + bslab_ref[brow:brow + 1, 0:OUT_PAD])


# ------------------------------ parameter init --------------------------------
def init_params(key, p):
    def u(key, shape, scale=0.1):
        return jax.random.uniform(key, shape, jnp.float32, -scale, scale)

    keys = iter(jax.random.split(key, 64))
    P = {}
    P["embed_words"] = u(next(keys), (p.vocab_size_words, p.embed_size_words))
    P["embed_pos"] = u(next(keys), (p.vocab_size_pos, p.embed_size_pos))

    H = p.bilstm_hidden_size
    in0 = p.embed_size_words + p.embed_size_pos
    lstm = []
    for layer in range(p.bilstm_num_layers):
        d_in = in0 if layer == 0 else 2 * H
        layer_p = {}
        for direction in ("fwd", "bwd"):
            wih = u(next(keys), (d_in, 4 * H))   # gate order (i, f, g, o)
            whh = u(next(keys), (H, 4 * H))
            b = u(next(keys), (4 * H,))          # combined b_ih + b_hh
            layer_p[direction] = (wih, whh, b)
        lstm.append(layer_p)
    P["lstm"] = lstm

    lin_ws, lin_bs = [], []
    sizes = [H] + list(p.linear_hidden_sizes)
    for i in range(len(sizes) - 1):
        lin_ws.append(u(next(keys), (sizes[i], sizes[i + 1])))
        lin_bs.append(u(next(keys), (sizes[i + 1],)))
    P["lin_ws"], P["lin_bs"] = lin_ws, lin_bs
    P["w_out"] = u(next(keys), (sizes[-1], p.vocab_size_tag))
    P["b_out"] = u(next(keys), (p.vocab_size_tag,))
    return P


# ------------------------------ forward (Pallas) ------------------------------
def pos_rnn_ner_forward(packed, meta, p, X):
    B, S = X.shape
    T = S // 2
    Bp = _round_up(B, 8)                       # pad batch to a full sublane group
    N = T * Bp

    kernel = functools.partial(_fused_forward_kernel, meta, T, B, Bp)
    out = pl.pallas_call(
        kernel,
        out_shape=jax.ShapeDtypeStruct((N, OUT_PAD), jnp.float32),
        in_specs=[
            pl.BlockSpec(memory_space=pltpu.MemorySpace.SMEM),   # raw int32 ids
            pl.BlockSpec(memory_space=pltpu.MemorySpace.VMEM),   # emb/proj table
            pl.BlockSpec(memory_space=pltpu.MemorySpace.VMEM),   # bf16 weight slab
            pl.BlockSpec(memory_space=pltpu.MemorySpace.VMEM),   # f32 bias slab
        ],
        out_specs=pl.BlockSpec(memory_space=pltpu.MemorySpace.VMEM),
        scratch_shapes=[pltpu.VMEM((N, meta["emb_rows"]), jnp.float32)],
    )(X.astype(jnp.int32), packed["emb_proj"], packed["wslab"], packed["bslab"])

    # TODO(synk): final (T,Bp,128)->(B,T,n_tags) slice+transpose stays as one
    # tiny XLA op; everything else is inside the single pallas_call.
    out = out.reshape(T, Bp, OUT_PAD)[:, :B, :p.vocab_size_tag]
    return jnp.transpose(out, (1, 0, 2))


# ------------------------------ pure-JAX reference ----------------------------
def _ref_lstm_dir(x_tbd, wih, whh, b):
    H = whh.shape[0]
    B = x_tbd.shape[1]

    def step(carry, x_t):
        h, c = carry
        g = x_t @ wih + h @ whh + b
        i = jax.nn.sigmoid(g[:, :H])
        f = jax.nn.sigmoid(g[:, H:2 * H])
        gg = jnp.tanh(g[:, 2 * H:3 * H])
        o = jax.nn.sigmoid(g[:, 3 * H:])
        c = f * c + i * gg
        h = o * jnp.tanh(c)
        return (h, c), h

    init = (jnp.zeros((B, H), jnp.float32), jnp.zeros((B, H), jnp.float32))
    _, hs = jax.lax.scan(step, init, x_tbd)
    return hs


def ref_forward(P, p, X):
    B, S = X.shape
    T = S // 2
    H = p.bilstm_hidden_size
    ew = jnp.take(P["embed_words"], X[:, :T], axis=0)
    ep = jnp.take(P["embed_pos"], X[:, T:], axis=0)
    inp = jnp.concatenate([ew, ep], axis=2)
    for layer in range(p.bilstm_num_layers):
        wih_f, whh_f, b_f = P["lstm"][layer]["fwd"]
        wih_b, whh_b, b_b = P["lstm"][layer]["bwd"]
        x_tbd = jnp.transpose(inp, (1, 0, 2))
        h_f = _ref_lstm_dir(x_tbd, wih_f, whh_f, b_f)
        h_b = _ref_lstm_dir(x_tbd[::-1], wih_b, whh_b, b_b)[::-1]
        inp = jnp.transpose(jnp.concatenate([h_f, h_b], axis=-1), (1, 0, 2))
    out = inp[:, :, :H] + inp[:, :, H:]
    for w, b in zip(P["lin_ws"], P["lin_bs"]):
        out = jnp.maximum(out @ w + b, 0.0)
    return out @ P["w_out"] + P["b_out"]


# ----------------------------------- main --------------------------------------
if __name__ == "__main__":
    p = Params()
    key = jax.random.PRNGKey(0)
    k_param, k_w, k_p = jax.random.split(key, 3)

    P = init_params(k_param, p)
    packed, meta = pack_params(P, p)          # one-time host-side packing

    batch, seq_len = 2, 16                    # seq_len//2 = 8 tokens per sentence
    X_words = jax.random.randint(k_w, (batch, seq_len // 2), 0,
                                 p.vocab_size_words, jnp.int32)
    X_pos = jax.random.randint(k_p, (batch, seq_len // 2), 0,
                               p.vocab_size_pos, jnp.int32)
    X = jnp.concatenate([X_words, X_pos], axis=1)          # (2, 16)

    fwd = jax.jit(lambda x: pos_rnn_ner_forward(packed, meta, p, x))
    out = jax.block_until_ready(fwd(X))
    ref = jax.block_until_ready(ref_forward(P, p, X))

    assert out.shape == (batch, seq_len // 2, p.vocab_size_tag), out.shape
    # bf16 MXU operands in the kernel -> relaxed tolerance vs. the f32 reference.
    np.testing.assert_allclose(np.asarray(out), np.asarray(ref),
                               rtol=2e-2, atol=2e-2)
    print("KERNEL_OK")
</pallas_src>

<mosaic_0001>
module attributes {stable_mosaic.version = 11 : i64} {
  func.func @_fused_forward_kernel(%arg0: memref<2x16xi32, #tpu.memory_space<smem>>, %arg1: memref<128x256xf32, #tpu.memory_space<vmem>>, %arg2: memref<288x256xbf16, #tpu.memory_space<vmem>>, %arg3: memref<8x256xf32, #tpu.memory_space<vmem>>, %arg4: memref<64x128xf32, #tpu.memory_space<vmem>>, %arg5: memref<64x128xf32, #tpu.memory_space<vmem>>) attributes {dimension_semantics = [], scalar_prefetch = 0 : i64, scratch_operands = 1 : i64, tpu.core_type = #tpu.core_type<tc>} {
    %0 = tpu.iota {dimensions = array<i32: 1>} : vector<8x256xi32>
    %c63_i32 = arith.constant 63 : i32
    %1 = vector.broadcast %c63_i32 : i32 to vector<8x256xi32>
    %2 = arith.andi %0, %1 : vector<8x256xi32>
    %c32_i32 = arith.constant 32 : i32
    %3 = vector.broadcast %c32_i32 : i32 to vector<8x256xi32>
    %4 = arith.cmpi slt, %2, %3 : vector<8x256xi32>
    %5 = tpu.iota {dimensions = array<i32: 1>} : vector<8x64xi32>
    %c32_i32_0 = arith.constant 32 : i32
    %6 = vector.broadcast %c32_i32_0 : i32 to vector<8x64xi32>
    %7 = arith.cmpi slt, %5, %6 : vector<8x64xi32>
    %cst = arith.constant 0.000000e+00 : f32
    %8 = vector.broadcast %cst : f32 to vector<64x128xf32>
    %c0 = arith.constant 0 : index
    %c0_1 = arith.constant 0 : index
    %9 = vector.load %arg5[%c0, %c0_1] : memref<64x128xf32, #tpu.memory_space<vmem>>, vector<64x128xf32>
    tpu.vector_store %arg5[%c0, %c0_1], %8 {strides = array<i32>} : memref<64x128xf32, #tpu.memory_space<vmem>>, vector<64x128xf32>,
    %10 = tpu.iota {dimensions = array<i32: 1>} : vector<1x128xi32>
    %c0_2 = arith.constant 0 : index
    %c0_3 = arith.constant 0 : index
    %11 = memref.load %arg0[%c0_2, %c0_3] : memref<2x16xi32, #tpu.memory_space<smem>>
    %c0_4 = arith.constant 0 : index
    %c8 = arith.constant 8 : index
    %12 = memref.load %arg0[%c0_4, %c8] : memref<2x16xi32, #tpu.memory_space<smem>>
    %c100_i32 = arith.constant 100 : i32
    %13 = arith.addi %12, %c100_i32 : i32
    %14 = vector.broadcast %11 : i32 to vector<1x128xi32>
    %15 = arith.cmpi eq, %10, %14 : vector<1x128xi32>
    %16 = vector.broadcast %13 : i32 to vector<1x128xi32>
    %17 = arith.cmpi eq, %10, %16 : vector<1x128xi32>
    %18 = arith.ori %15, %17 : vector<1x128xi1>
    %19 = arith.extui %18 : vector<1x128xi1> to vector<1x128xi32>
    %20 = arith.sitofp %19 : vector<1x128xi32> to vector<1x128xf32>
    %c0_5 = arith.constant 0 : index
    %c0_6 = arith.constant 0 : index
    %21 = vector.load %arg5[%c0_5, %c0_6] : memref<64x128xf32, #tpu.memory_space<vmem>>, vector<1x128xf32>
    tpu.vector_store %arg5[%c0_5, %c0_6], %20 {strides = array<i32>} : memref<64x128xf32, #tpu.memory_space<vmem>>, vector<1x128xf32>,
    %c1 = arith.constant 1 : index
    %c0_7 = arith.constant 0 : index
    %22 = memref.load %arg0[%c1, %c0_7] : memref<2x16xi32, #tpu.memory_space<smem>>
    %c1_8 = arith.constant 1 : index
    %c8_9 = arith.constant 8 : index
    %23 = memref.load %arg0[%c1_8, %c8_9] : memref<2x16xi32, #tpu.memory_space<smem>>
    %c100_i32_10 = arith.constant 100 : i32
    %24 = arith.addi %23, %c100_i32_10 : i32
    %25 = vector.broadcast %22 : i32 to vector<1x128xi32>
    %26 = arith.cmpi eq, %10, %25 : vector<1x128xi32>
    %27 = vector.broadcast %24 : i32 to vector<1x128xi32>
    %28 = arith.cmpi eq, %10, %27 : vector<1x128xi32>
    %29 = arith.ori %26, %28 : vector<1x128xi1>
    %30 = arith.extui %29 : vector<1x128xi1> to vector<1x128xi32>
    %31 = arith.sitofp %30 : vector<1x128xi32> to vector<1x128xf32>
    %c1_11 = arith.constant 1 : index
    %c0_12 = arith.constant 0 : index
    %32 = vector.load %arg5[%c1_11, %c0_12] : memref<64x128xf32, #tpu.memory_space<vmem>>, vector<1x128xf32>
    tpu.vector_store %arg5[%c1_11, %c0_12], %31 {strides = array<i32>} : memref<64x128xf32, #tpu.memory_space<vmem>>, vector<1x128xf32>,
    %c0_13 = arith.constant 0 : index
    %c1_14 = arith.constant 1 : index
    %33 = memref.load %arg0[%c0_13, %c1_14] : memref<2x16xi32, #tpu.memory_space<smem>>
    %c0_15 = arith.constant 0 : index
    %c9 = arith.constant 9 : index
    %34 = memref.load %arg0[%c0_15, %c9] : memref<2x16xi32, #tpu.memory_space<smem>>
    %c100_i32_16 = arith.constant 100 : i32
    %35 = arith.addi %34, %c100_i32_16 : i32
    %36 = vector.broadcast %33 : i32 to vector<1x128xi32>
    %37 = arith.cmpi eq, %10, %36 : vector<1x128xi32>
    %38 = vector.broadcast %35 : i32 to vector<1x128xi32>
    %39 = arith.cmpi eq, %10, %38 : vector<1x128xi32>
    %40 = arith.ori %37, %39 : vector<1x128xi1>
    %41 = arith.extui %40 : vector<1x128xi1> to vector<1x128xi32>
    %42 = arith.sitofp %41 : vector<1x128xi32> to vector<1x128xf32>
    %c8_17 = arith.constant 8 : index
    %c0_18 = arith.constant 0 : index
    %43 = vector.load %arg5[%c8_17, %c0_18] : memref<64x128xf32, #tpu.memory_space<vmem>>, vector<1x128xf32>
    tpu.vector_store %arg5[%c8_17, %c0_18], %42 {strides = array<i32>} : memref<64x128xf32, #tpu.memory_space<vmem>>, vector<1x128xf32>,
    %c1_19 = arith.constant 1 : index
    %c1_20 = arith.constant 1 : index
    %44 = memref.load %arg0[%c1_19, %c1_20] : memref<2x16xi32, #tpu.memory_space<smem>>
    %c1_21 = arith.constant 1 : index
    %c9_22 = arith.constant 9 : index
    %45 = memref.load %arg0[%c1_21, %c9_22] : memref<2x16xi32, #tpu.memory_space<smem>>
    %c100_i32_23 = arith.constant 100 : i32
    %46 = arith.addi %45, %c100_i32_23 : i32
    %47 = vector.broadcast %44 : i32 to vector<1x128xi32>
    %48 = arith.cmpi eq, %10, %47 : vector<1x128xi32>
    %49 = vector.broadcast %46 : i32 to vector<1x128xi32>
    %50 = arith.cmpi eq, %10, %49 : vector<1x128xi32>
    %51 = arith.ori %48, %50 : vector<1x128xi1>
    %52 = arith.extui %51 : vector<1x128xi1> to vector<1x128xi32>
    %53 = arith.sitofp %52 : vector<1x128xi32> to vector<1x128xf32>
    %c9_24 = arith.constant 9 : index
    %c0_25 = arith.constant 0 : index
    %54 = vector.load %arg5[%c9_24, %c0_25] : memref<64x128xf32, #tpu.memory_space<vmem>>, vector<1x128xf32>
    tpu.vector_store %arg5[%c9_24, %c0_25], %53 {strides = array<i32>} : memref<64x128xf32, #tpu.memory_space<vmem>>, vector<1x128xf32>,
    %c0_26 = arith.constant 0 : index
    %c2 = arith.constant 2 : index
    %55 = memref.load %arg0[%c0_26, %c2] : memref<2x16xi32, #tpu.memory_space<smem>>
    %c0_27 = arith.constant 0 : index
    %c10 = arith.constant 10 : index
    %56 = memref.load %arg0[%c0_27, %c10] : memref<2x16xi32, #tpu.memory_space<smem>>
    %c100_i32_28 = arith.constant 100 : i32
    %57 = arith.addi %56, %c100_i32_28 : i32
    %58 = vector.broadcast %55 : i32 to vector<1x128xi32>
    %59 = arith.cmpi eq, %10, %58 : vector<1x128xi32>
    %60 = vector.broadcast %57 : i32 to vector<1x128xi32>
    %61 = arith.cmpi eq, %10, %60 : vector<1x128xi32>
    %62 = arith.ori %59, %61 : vector<1x128xi1>
    %63 = arith.extui %62 : vector<1x128xi1> to vector<1x128xi32>
    %64 = arith.sitofp %63 : vector<1x128xi32> to vector<1x128xf32>
    %c16 = arith.constant 16 : index
    %c0_29 = arith.constant 0 : index
    %65 = vector.load %arg5[%c16, %c0_29] : memref<64x128xf32, #tpu.memory_space<vmem>>, vector<1x128xf32>
    tpu.vector_store %arg5[%c16, %c0_29], %64 {strides = array<i32>} : memref<64x128xf32, #tpu.memory_space<vmem>>, vector<1x128xf32>,
    %c1_30 = arith.constant 1 : index
    %c2_31 = arith.constant 2 : index
    %66 = memref.load %arg0[%c1_30, %c2_31] : memref<2x16xi32, #tpu.memory_space<smem>>
    %c1_32 = arith.constant 1 : index
    %c10_33 = arith.constant 10 : index
    %67 = memref.load %arg0[%c1_32, %c10_33] : memref<2x16xi32, #tpu.memory_space<smem>>
    %c100_i32_34 = arith.constant 100 : i32
    %68 = arith.addi %67, %c100_i32_34 : i32
    %69 = vector.broadcast %66 : i32 to vector<1x128xi32>
    %70 = arith.cmpi eq, %10, %69 : vector<1x128xi32>
    %71 = vector.broadcast %68 : i32 to vector<1x128xi32>
    %72 = arith.cmpi eq, %10, %71 : vector<1x128xi32>
    %73 = arith.ori %70, %72 : vector<1x128xi1>
    %74 = arith.extui %73 : vector<1x128xi1> to vector<1x128xi32>
    %75 = arith.sitofp %74 : vector<1x128xi32> to vector<1x128xf32>
    %c17 = arith.constant 17 : index
    %c0_35 = arith.constant 0 : index
    %76 = vector.load %arg5[%c17, %c0_35] : memref<64x128xf32, #tpu.memory_space<vmem>>, vector<1x128xf32>
    tpu.vector_store %arg5[%c17, %c0_35], %75 {strides = array<i32>} : memref<64x128xf32, #tpu.memory_space<vmem>>, vector<1x128xf32>,
    %c0_36 = arith.constant 0 : index
    %c3 = arith.constant 3 : index
    %77 = memref.load %arg0[%c0_36, %c3] : memref<2x16xi32, #tpu.memory_space<smem>>
    %c0_37 = arith.constant 0 : index
    %c11 = arith.constant 11 : index
    %78 = memref.load %arg0[%c0_37, %c11] : memref<2x16xi32, #tpu.memory_space<smem>>
    %c100_i32_38 = arith.constant 100 : i32
    %79 = arith.addi %78, %c100_i32_38 : i32
    %80 = vector.broadcast %77 : i32 to vector<1x128xi32>
    %81 = arith.cmpi eq, %10, %80 : vector<1x128xi32>
    %82 = vector.broadcast %79 : i32 to vector<1x128xi32>
    %83 = arith.cmpi eq, %10, %82 : vector<1x128xi32>
    %84 = arith.ori %81, %83 : vector<1x128xi1>
    %85 = arith.extui %84 : vector<1x128xi1> to vector<1x128xi32>
    %86 = arith.sitofp %85 : vector<1x128xi32> to vector<1x128xf32>
    %c24 = arith.constant 24 : index
    %c0_39 = arith.constant 0 : index
    %87 = vector.load %arg5[%c24, %c0_39] : memref<64x128xf32, #tpu.memory_space<vmem>>, vector<1x128xf32>
    tpu.vector_store %arg5[%c24, %c0_39], %86 {strides = array<i32>} : memref<64x128xf32, #tpu.memory_space<vmem>>, vector<1x128xf32>,
    %c1_40 = arith.constant 1 : index
    %c3_41 = arith.constant 3 : index
    %88 = memref.load %arg0[%c1_40, %c3_41] : memref<2x16xi32, #tpu.memory_space<smem>>
    %c1_42 = arith.constant 1 : index
    %c11_43 = arith.constant 11 : index
    %89 = memref.load %arg0[%c1_42, %c11_43] : memref<2x16xi32, #tpu.memory_space<smem>>
    %c100_i32_44 = arith.constant 100 : i32
    %90 = arith.addi %89, %c100_i32_44 : i32
    %91 = vector.broadcast %88 : i32 to vector<1x128xi32>
    %92 = arith.cmpi eq, %10, %91 : vector<1x128xi32>
    %93 = vector.broadcast %90 : i32 to vector<1x128xi32>
    %94 = arith.cmpi eq, %10, %93 : vector<1x128xi32>
    %95 = arith.ori %92, %94 : vector<1x128xi1>
    %96 = arith.extui %95 : vector<1x128xi1> to vector<1x128xi32>
    %97 = arith.sitofp %96 : vector<1x128xi32> to vector<1x128xf32>
    %c25 = arith.constant 25 : index
    %c0_45 = arith.constant 0 : index
    %98 = vector.load %arg5[%c25, %c0_45] : memref<64x128xf32, #tpu.memory_space<vmem>>, vector<1x128xf32>
    tpu.vector_store %arg5[%c25, %c0_45], %97 {strides = array<i32>} : memref<64x128xf32, #tpu.memory_space<vmem>>, vector<1x128xf32>,
    %c0_46 = arith.constant 0 : index
    %c4 = arith.constant 4 : index
    %99 = memref.load %arg0[%c0_46, %c4] : memref<2x16xi32, #tpu.memory_space<smem>>
    %c0_47 = arith.constant 0 : index
    %c12 = arith.constant 12 : index
    %100 = memref.load %arg0[%c0_47, %c12] : memref<2x16xi32, #tpu.memory_space<smem>>
    %c100_i32_48 = arith.constant 100 : i32
    %101 = arith.addi %100, %c100_i32_48 : i32
    %102 = vector.broadcast %99 : i32 to vector<1x128xi32>
    %103 = arith.cmpi eq, %10, %102 : vector<1x128xi32>
    %104 = vector.broadcast %101 : i32 to vector<1x128xi32>
    %105 = arith.cmpi eq, %10, %104 : vector<1x128xi32>
    %106 = arith.ori %103, %105 : vector<1x128xi1>
    %107 = arith.extui %106 : vector<1x128xi1> to vector<1x128xi32>
    %108 = arith.sitofp %107 : vector<1x128xi32> to vector<1x128xf32>
    %c32 = arith.constant 32 : index
    %c0_49 = arith.constant 0 : index
    %109 = vector.load %arg5[%c32, %c0_49] : memref<64x128xf32, #tpu.memory_space<vmem>>, vector<1x128xf32>
    tpu.vector_store %arg5[%c32, %c0_49], %108 {strides = array<i32>} : memref<64x128xf32, #tpu.memory_space<vmem>>, vector<1x128xf32>,
    %c1_50 = arith.constant 1 : index
    %c4_51 = arith.constant 4 : index
    %110 = memref.load %arg0[%c1_50, %c4_51] : memref<2x16xi32, #tpu.memory_space<smem>>
    %c1_52 = arith.constant 1 : index
    %c12_53 = arith.constant 12 : index
    %111 = memref.load %arg0[%c1_52, %c12_53] : memref<2x16xi32, #tpu.memory_space<smem>>
    %c100_i32_54 = arith.constant 100 : i32
    %112 = arith.addi %111, %c100_i32_54 : i32
    %113 = vector.broadcast %110 : i32 to vector<1x128xi32>
    %114 = arith.cmpi eq, %10, %113 : vector<1x128xi32>
    %115 = vector.broadcast %112 : i32 to vector<1x128xi32>
    %116 = arith.cmpi eq, %10, %115 : vector<1x128xi32>
    %117 = arith.ori %114, %116 : vector<1x128xi1>
    %118 = arith.extui %117 : vector<1x128xi1> to vector<1x128xi32>
    %119 = arith.sitofp %118 : vector<1x128xi32> to vector<1x128xf32>
    %c33 = arith.constant 33 : index
    %c0_55 = arith.constant 0 : index
    %120 = vector.load %arg5[%c33, %c0_55] : memref<64x128xf32, #tpu.memory_space<vmem>>, vector<1x128xf32>
    tpu.vector_store %arg5[%c33, %c0_55], %119 {strides = array<i32>} : memref<64x128xf32, #tpu.memory_space<vmem>>, vector<1x128xf32>,
    %c0_56 = arith.constant 0 : index
    %c5 = arith.constant 5 : index
    %121 = memref.load %arg0[%c0_56, %c5] : memref<2x16xi32, #tpu.memory_space<smem>>
    %c0_57 = arith.constant 0 : index
    %c13 = arith.constant 13 : index
    %122 = memref.load %arg0[%c0_57, %c13] : memref<2x16xi32, #tpu.memory_space<smem>>
    %c100_i32_58 = arith.constant 100 : i32
    %123 = arith.addi %122, %c100_i32_58 : i32
    %124 = vector.broadcast %121 : i32 to vector<1x128xi32>
    %125 = arith.cmpi eq, %10, %124 : vector<1x128xi32>
    %126 = vector.broadcast %123 : i32 to vector<1x128xi32>
    %127 = arith.cmpi eq, %10, %126 : vector<1x128xi32>
    %128 = arith.ori %125, %127 : vector<1x128xi1>
    %129 = arith.extui %128 : vector<1x128xi1> to vector<1x128xi32>
    %130 = arith.sitofp %129 : vector<1x128xi32> to vector<1x128xf32>
    %c40 = arith.constant 40 : index
    %c0_59 = arith.constant 0 : index
    %131 = vector.load %arg5[%c40, %c0_59] : memref<64x128xf32, #tpu.memory_space<vmem>>, vector<1x128xf32>
    tpu.vector_store %arg5[%c40, %c0_59], %130 {strides = array<i32>} : memref<64x128xf32, #tpu.memory_space<vmem>>, vector<1x128xf32>,
    %c1_60 = arith.constant 1 : index
    %c5_61 = arith.constant 5 : index
    %132 = memref.load %arg0[%c1_60, %c5_61] : memref<2x16xi32, #tpu.memory_space<smem>>
    %c1_62 = arith.constant 1 : index
    %c13_63 = arith.constant 13 : index
    %133 = memref.load %arg0[%c1_62, %c13_63] : memref<2x16xi32, #tpu.memory_space<smem>>
    %c100_i32_64 = arith.constant 100 : i32
    %134 = arith.addi %133, %c100_i32_64 : i32
    %135 = vector.broadcast %132 : i32 to vector<1x128xi32>
    %136 = arith.cmpi eq, %10, %135 : vector<1x128xi32>
    %137 = vector.broadcast %134 : i32 to vector<1x128xi32>
    %138 = arith.cmpi eq, %10, %137 : vector<1x128xi32>
    %139 = arith.ori %136, %138 : vector<1x128xi1>
    %140 = arith.extui %139 : vector<1x128xi1> to vector<1x128xi32>
    %141 = arith.sitofp %140 : vector<1x128xi32> to vector<1x128xf32>
    %c41 = arith.constant 41 : index
    %c0_65 = arith.constant 0 : index
    %142 = vector.load %arg5[%c41, %c0_65] : memref<64x128xf32, #tpu.memory_space<vmem>>, vector<1x128xf32>
    tpu.vector_store %arg5[%c41, %c0_65], %141 {strides = array<i32>} : memref<64x128xf32, #tpu.memory_space<vmem>>, vector<1x128xf32>,
    %c0_66 = arith.constant 0 : index
    %c6 = arith.constant 6 : index
    %143 = memref.load %arg0[%c0_66, %c6] : memref<2x16xi32, #tpu.memory_space<smem>>
    %c0_67 = arith.constant 0 : index
    %c14 = arith.constant 14 : index
    %144 = memref.load %arg0[%c0_67, %c14] : memref<2x16xi32, #tpu.memory_space<smem>>
    %c100_i32_68 = arith.constant 100 : i32
    %145 = arith.addi %144, %c100_i32_68 : i32
    %146 = vector.broadcast %143 : i32 to vector<1x128xi32>
    %147 = arith.cmpi eq, %10, %146 : vector<1x128xi32>
    %148 = vector.broadcast %145 : i32 to vector<1x128xi32>
    %149 = arith.cmpi eq, %10, %148 : vector<1x128xi32>
    %150 = arith.ori %147, %149 : vector<1x128xi1>
    %151 = arith.extui %150 : vector<1x128xi1> to vector<1x128xi32>
    %152 = arith.sitofp %151 : vector<1x128xi32> to vector<1x128xf32>
    %c48 = arith.constant 48 : index
    %c0_69 = arith.constant 0 : index
    %153 = vector.load %arg5[%c48, %c0_69] : memref<64x128xf32, #tpu.memory_space<vmem>>, vector<1x128xf32>
    tpu.vector_store %arg5[%c48, %c0_69], %152 {strides = array<i32>} : memref<64x128xf32, #tpu.memory_space<vmem>>, vector<1x128xf32>,
    %c1_70 = arith.constant 1 : index
    %c6_71 = arith.constant 6 : index
    %154 = memref.load %arg0[%c1_70, %c6_71] : memref<2x16xi32, #tpu.memory_space<smem>>
    %c1_72 = arith.constant 1 : index
    %c14_73 = arith.constant 14 : index
    %155 = memref.load %arg0[%c1_72, %c14_73] : memref<2x16xi32, #tpu.memory_space<smem>>
    %c100_i32_74 = arith.constant 100 : i32
    %156 = arith.addi %155, %c100_i32_74 : i32
    %157 = vector.broadcast %154 : i32 to vector<1x128xi32>
    %158 = arith.cmpi eq, %10, %157 : vector<1x128xi32>
    %159 = vector.broadcast %156 : i32 to vector<1x128xi32>
    %160 = arith.cmpi eq, %10, %159 : vector<1x128xi32>
    %161 = arith.ori %158, %160 : vector<1x128xi1>
    %162 = arith.extui %161 : vector<1x128xi1> to vector<1x128xi32>
    %163 = arith.sitofp %162 : vector<1x128xi32> to vector<1x128xf32>
    %c49 = arith.constant 49 : index
    %c0_75 = arith.constant 0 : index
    %164 = vector.load %arg5[%c49, %c0_75] : memref<64x128xf32, #tpu.memory_space<vmem>>, vector<1x128xf32>
    tpu.vector_store %arg5[%c49, %c0_75], %163 {strides = array<i32>} : memref<64x128xf32, #tpu.memory_space<vmem>>, vector<1x128xf32>,
    %c0_76 = arith.constant 0 : index
    %c7 = arith.constant 7 : index
    %165 = memref.load %arg0[%c0_76, %c7] : memref<2x16xi32, #tpu.memory_space<smem>>
    %c0_77 = arith.constant 0 : index
    %c15 = arith.constant 15 : index
    %166 = memref.load %arg0[%c0_77, %c15] : memref<2x16xi32, #tpu.memory_space<smem>>
    %c100_i32_78 = arith.constant 100 : i32
    %167 = arith.addi %166, %c100_i32_78 : i32
    %168 = vector.broadcast %165 : i32 to vector<1x128xi32>
    %169 = arith.cmpi eq, %10, %168 : vector<1x128xi32>
    %170 = vector.broadcast %167 : i32 to vector<1x128xi32>
    %171 = arith.cmpi eq, %10, %170 : vector<1x128xi32>
    %172 = arith.ori %169, %171 : vector<1x128xi1>
    %173 = arith.extui %172 : vector<1x128xi1> to vector<1x128xi32>
    %174 = arith.sitofp %173 : vector<1x128xi32> to vector<1x128xf32>
    %c56 = arith.constant 56 : index
    %c0_79 = arith.constant 0 : index
    %175 = vector.load %arg5[%c56, %c0_79] : memref<64x128xf32, #tpu.memory_space<vmem>>, vector<1x128xf32>
    tpu.vector_store %arg5[%c56, %c0_79], %174 {strides = array<i32>} : memref<64x128xf32, #tpu.memory_space<vmem>>, vector<1x128xf32>,
    %c1_80 = arith.constant 1 : index
    %c7_81 = arith.constant 7 : index
    %176 = memref.load %arg0[%c1_80, %c7_81] : memref<2x16xi32, #tpu.memory_space<smem>>
    %c1_82 = arith.constant 1 : index
    %c15_83 = arith.constant 15 : index
    %177 = memref.load %arg0[%c1_82, %c15_83] : memref<2x16xi32, #tpu.memory_space<smem>>
    %c100_i32_84 = arith.constant 100 : i32
    %178 = arith.addi %177, %c100_i32_84 : i32
    %179 = vector.broadcast %176 : i32 to vector<1x128xi32>
    %180 = arith.cmpi eq, %10, %179 : vector<1x128xi32>
    %181 = vector.broadcast %178 : i32 to vector<1x128xi32>
    %182 = arith.cmpi eq, %10, %181 : vector<1x128xi32>
    %183 = arith.ori %180, %182 : vector<1x128xi1>
    %184 = arith.extui %183 : vector<1x128xi1> to vector<1x128xi32>
    %185 = arith.sitofp %184 : vector<1x128xi32> to vector<1x128xf32>
    %c57 = arith.constant 57 : index
    %c0_85 = arith.constant 0 : index
    %186 = vector.load %arg5[%c57, %c0_85] : memref<64x128xf32, #tpu.memory_space<vmem>>, vector<1x128xf32>
    tpu.vector_store %arg5[%c57, %c0_85], %185 {strides = array<i32>} : memref<64x128xf32, #tpu.memory_space<vmem>>, vector<1x128xf32>,
    %c0_86 = arith.constant 0 : index
    %c0_87 = arith.constant 0 : index
    %187 = vector.load %arg5[%c0_86, %c0_87] : memref<64x128xf32, #tpu.memory_space<vmem>>, vector<64x128xf32>
    %c0_88 = arith.constant 0 : index
    %c0_89 = arith.constant 0 : index
    %188 = vector.load %arg1[%c0_88, %c0_89] : memref<128x256xf32, #tpu.memory_space<vmem>>, vector<128x256xf32>
    %cst_90 = arith.constant dense<0.000000e+00> : vector<64x256xf32>
    %189 = tpu.matmul %187, %188, %cst_90 {dimension_numbers = #tpu.dot_dimension_numbers<[1], [0], [0], [1], [0, 0, 1, 1], [], []>} : vector<64x128xf32>, vector<128x256xf32>, vector<64x256xf32> -> vector<64x256xf32>
    %c0_91 = arith.constant 0 : index
    %c0_92 = arith.constant 0 : index
    %190 = vector.load %arg2[%c0_91, %c0_92] : memref<288x256xbf16, #tpu.memory_space<vmem>>, vector<64x256xbf16>
    %191 = vector.extract_strided_slice %189 {offsets = [0, 0], sizes = [8, 256], strides = [1, 1]} : vector<64x256xf32> to vector<8x256xf32>
    %192 = vector.extract_strided_slice %189 {offsets = [56, 0], sizes = [8, 256], strides = [1, 1]} : vector<64x256xf32> to vector<8x256xf32>
    %193 = arith.select %4, %191, %192 : vector<8x256xi1>, vector<8x256xf32>
    %194 = vector.extract_strided_slice %193 {offsets = [0, 0], sizes = [8, 192], strides = [1, 1]} : vector<8x256xf32> to vector<8x192xf32>
    %195 = math.tanh %194 : vector<8x192xf32>
    %cst_93 = arith.constant 5.000000e-01 : f32
    %196 = vector.broadcast %cst_93 : f32 to vector<8x192xf32>
    %197 = arith.mulf %195, %196 : vector<8x192xf32>
    %cst_94 = arith.constant 5.000000e-01 : f32
    %198 = vector.broadcast %cst_94 : f32 to vector<8x192xf32>
    %199 = arith.addf %197, %198 : vector<8x192xf32>
    %200 = vector.extract_strided_slice %199 {offsets = [0, 0], sizes = [8, 64], strides = [1, 1]} : vector<8x192xf32> to vector<8x64xf32>
    %201 = vector.extract_strided_slice %199 {offsets = [0, 128], sizes = [8, 64], strides = [1, 1]} : vector<8x192xf32> to vector<8x64xf32>
    %202 = vector.extract_strided_slice %193 {offsets = [0, 192], sizes = [8, 64], strides = [1, 1]} : vector<8x256xf32> to vector<8x64xf32>
    %203 = math.tanh %202 : vector<8x64xf32>
    %204 = arith.mulf %200, %203 : vector<8x64xf32>
    %205 = math.tanh %204 : vector<8x64xf32>
    %206 = arith.mulf %201, %205 : vector<8x64xf32>
    %207 = vector.extract_strided_slice %189 {offsets = [8, 0], sizes = [8, 256], strides = [1, 1]} : vector<64x256xf32> to vector<8x256xf32>
    %208 = vector.extract_strided_slice %189 {offsets = [48, 0], sizes = [8, 256], strides = [1, 1]} : vector<64x256xf32> to vector<8x256xf32>
    %209 = arith.select %4, %207, %208 : vector<8x256xi1>, vector<8x256xf32>
    %210 = arith.truncf %206 : vector<8x64xf32> to vector<8x64xbf16>
    %cst_95 = arith.constant dense<0.000000e+00> : vector<8x256xf32>
    %211 = tpu.matmul %210, %190, %cst_95 {dimension_numbers = #tpu.dot_dimension_numbers<[1], [0], [0], [1], [0, 0, 1, 1], [], []>} : vector<8x64xbf16>, vector<64x256xbf16>, vector<8x256xf32> -> vector<8x256xf32>
    %212 = arith.addf %209, %211 : vector<8x256xf32>
    %213 = vector.extract_strided_slice %212 {offsets = [0, 0], sizes = [8, 192], strides = [1, 1]} : vector<8x256xf32> to vector<8x192xf32>
    %214 = math.tanh %213 : vector<8x192xf32>
    %cst_96 = arith.constant 5.000000e-01 : f32
    %215 = vector.broadcast %cst_96 : f32 to vector<8x192xf32>
    %216 = arith.mulf %214, %215 : vector<8x192xf32>
    %cst_97 = arith.constant 5.000000e-01 : f32
    %217 = vector.broadcast %cst_97 : f32 to vector<8x192xf32>
    %218 = arith.addf %216, %217 : vector<8x192xf32>
    %219 = vector.extract_strided_slice %218 {offsets = [0, 0], sizes = [8, 64], strides = [1, 1]} : vector<8x192xf32> to vector<8x64xf32>
    %220 = vector.extract_strided_slice %218 {offsets = [0, 64], sizes = [8, 64], strides = [1, 1]} : vector<8x192xf32> to vector<8x64xf32>
    %221 = vector.extract_strided_slice %218 {offsets = [0, 128], sizes = [8, 64], strides = [1, 1]} : vector<8x192xf32> to vector<8x64xf32>
    %222 = vector.extract_strided_slice %212 {offsets = [0, 192], sizes = [8, 64], strides = [1, 1]} : vector<8x256xf32> to vector<8x64xf32>
    %223 = math.tanh %222 : vector<8x64xf32>
    %224 = arith.mulf %220, %204 : vector<8x64xf32>
    %225 = arith.mulf %219, %223 : vector<8x64xf32>
    %226 = arith.addf %224, %225 : vector<8x64xf32>
    %227 = math.tanh %226 : vector<8x64xf32>
    %228 = arith.mulf %221, %227 : vector<8x64xf32>
    %229 = vector.extract_strided_slice %189 {offsets = [16, 0], sizes = [8, 256], strides = [1, 1]} : vector<64x256xf32> to vector<8x256xf32>
    %230 = vector.extract_strided_slice %189 {offsets = [40, 0], sizes = [8, 256], strides = [1, 1]} : vector<64x256xf32> to vector<8x256xf32>
    %231 = arith.select %4, %229, %230 : vector<8x256xi1>, vector<8x256xf32>
    %232 = arith.truncf %228 : vector<8x64xf32> to vector<8x64xbf16>
    %cst_98 = arith.constant dense<0.000000e+00> : vector<8x256xf32>
    %233 = tpu.matmul %232, %190, %cst_98 {dimension_numbers = #tpu.dot_dimension_numbers<[1], [0], [0], [1], [0, 0, 1, 1], [], []>} : vector<8x64xbf16>, vector<64x256xbf16>, vector<8x256xf32> -> vector<8x256xf32>
    %234 = arith.addf %231, %233 : vector<8x256xf32>
    %235 = vector.extract_strided_slice %234 {offsets = [0, 0], sizes = [8, 192], strides = [1, 1]} : vector<8x256xf32> to vector<8x192xf32>
    %236 = math.tanh %235 : vector<8x192xf32>
    %cst_99 = arith.constant 5.000000e-01 : f32
    %237 = vector.broadcast %cst_99 : f32 to vector<8x192xf32>
    %238 = arith.mulf %236, %237 : vector<8x192xf32>
    %cst_100 = arith.constant 5.000000e-01 : f32
    %239 = vector.broadcast %cst_100 : f32 to vector<8x192xf32>
    %240 = arith.addf %238, %239 : vector<8x192xf32>
    %241 = vector.extract_strided_slice %240 {offsets = [0, 0], sizes = [8, 64], strides = [1, 1]} : vector<8x192xf32> to vector<8x64xf32>
    %242 = vector.extract_strided_slice %240 {offsets = [0, 64], sizes = [8, 64], strides = [1, 1]} : vector<8x192xf32> to vector<8x64xf32>
    %243 = vector.extract_strided_slice %240 {offsets = [0, 128], sizes = [8, 64], strides = [1, 1]} : vector<8x192xf32> to vector<8x64xf32>
    %244 = vector.extract_strided_slice %234 {offsets = [0, 192], sizes = [8, 64], strides = [1, 1]} : vector<8x256xf32> to vector<8x64xf32>
    %245 = math.tanh %244 : vector<8x64xf32>
    %246 = arith.mulf %242, %226 : vector<8x64xf32>
    %247 = arith.mulf %241, %245 : vector<8x64xf32>
    %248 = arith.addf %246, %247 : vector<8x64xf32>
    %249 = math.tanh %248 : vector<8x64xf32>
    %250 = arith.mulf %243, %249 : vector<8x64xf32>
    %251 = vector.extract_strided_slice %189 {offsets = [24, 0], sizes = [8, 256], strides = [1, 1]} : vector<64x256xf32> to vector<8x256xf32>
    %252 = vector.extract_strided_slice %189 {offsets = [32, 0], sizes = [8, 256], strides = [1, 1]} : vector<64x256xf32> to vector<8x256xf32>
    %253 = arith.select %4, %251, %252 : vector<8x256xi1>, vector<8x256xf32>
    %254 = arith.truncf %250 : vector<8x64xf32> to vector<8x64xbf16>
    %cst_101 = arith.constant dense<0.000000e+00> : vector<8x256xf32>
    %255 = tpu.matmul %254, %190, %cst_101 {dimension_numbers = #tpu.dot_dimension_numbers<[1], [0], [0], [1], [0, 0, 1, 1], [], []>} : vector<8x64xbf16>, vector<64x256xbf16>, vector<8x256xf32> -> vector<8x256xf32>
    %256 = arith.addf %253, %255 : vector<8x256xf32>
    %257 = vector.extract_strided_slice %256 {offsets = [0, 0], sizes = [8, 192], strides = [1, 1]} : vector<8x256xf32> to vector<8x192xf32>
    %258 = math.tanh %257 : vector<8x192xf32>
    %cst_102 = arith.constant 5.000000e-01 : f32
    %259 = vector.broadcast %cst_102 : f32 to vector<8x192xf32>
    %260 = arith.mulf %258, %259 : vector<8x192xf32>
    %cst_103 = arith.constant 5.000000e-01 : f32
    %261 = vector.broadcast %cst_103 : f32 to vector<8x192xf32>
    %262 = arith.addf %260, %261 : vector<8x192xf32>
    %263 = vector.extract_strided_slice %262 {offsets = [0, 0], sizes = [8, 64], strides = [1, 1]} : vector<8x192xf32> to vector<8x64xf32>
    %264 = vector.extract_strided_slice %262 {offsets = [0, 64], sizes = [8, 64], strides = [1, 1]} : vector<8x192xf32> to vector<8x64xf32>
    %265 = vector.extract_strided_slice %262 {offsets = [0, 128], sizes = [8, 64], strides = [1, 1]} : vector<8x192xf32> to vector<8x64xf32>
    %266 = vector.extract_strided_slice %256 {offsets = [0, 192], sizes = [8, 64], strides = [1, 1]} : vector<8x256xf32> to vector<8x64xf32>
    %267 = math.tanh %266 : vector<8x64xf32>
    %268 = arith.mulf %264, %248 : vector<8x64xf32>
    %269 = arith.mulf %263, %267 : vector<8x64xf32>
    %270 = arith.addf %268, %269 : vector<8x64xf32>
    %271 = math.tanh %270 : vector<8x64xf32>
    %272 = arith.mulf %265, %271 : vector<8x64xf32>
    %273 = vector.extract_strided_slice %189 {offsets = [32, 0], sizes = [8, 256], strides = [1, 1]} : vector<64x256xf32> to vector<8x256xf32>
    %274 = vector.extract_strided_slice %189 {offsets = [24, 0], sizes = [8, 256], strides = [1, 1]} : vector<64x256xf32> to vector<8x256xf32>
    %275 = arith.select %4, %273, %274 : vector<8x256xi1>, vector<8x256xf32>
    %276 = arith.truncf %272 : vector<8x64xf32> to vector<8x64xbf16>
    %cst_104 = arith.constant dense<0.000000e+00> : vector<8x256xf32>
    %277 = tpu.matmul %276, %190, %cst_104 {dimension_numbers = #tpu.dot_dimension_numbers<[1], [0], [0], [1], [0, 0, 1, 1], [], []>} : vector<8x64xbf16>, vector<64x256xbf16>, vector<8x256xf32> -> vector<8x256xf32>
    %278 = arith.addf %275, %277 : vector<8x256xf32>
    %279 = vector.extract_strided_slice %278 {offsets = [0, 0], sizes = [8, 192], strides = [1, 1]} : vector<8x256xf32> to vector<8x192xf32>
    %280 = math.tanh %279 : vector<8x192xf32>
    %cst_105 = arith.constant 5.000000e-01 : f32
    %281 = vector.broadcast %cst_105 : f32 to vector<8x192xf32>
    %282 = arith.mulf %280, %281 : vector<8x192xf32>
    %cst_106 = arith.constant 5.000000e-01 : f32
    %283 = vector.broadcast %cst_106 : f32 to vector<8x192xf32>
    %284 = arith.addf %282, %283 : vector<8x192xf32>
    %285 = vector.extract_strided_slice %284 {offsets = [0, 0], sizes = [8, 64], strides = [1, 1]} : vector<8x192xf32> to vector<8x64xf32>
    %286 = vector.extract_strided_slice %284 {offsets = [0, 64], sizes = [8, 64], strides = [1, 1]} : vector<8x192xf32> to vector<8x64xf32>
    %287 = vector.extract_strided_slice %284 {offsets = [0, 128], sizes = [8, 64], strides = [1, 1]} : vector<8x192xf32> to vector<8x64xf32>
    %288 = vector.extract_strided_slice %278 {offsets = [0, 192], sizes = [8, 64], strides = [1, 1]} : vector<8x256xf32> to vector<8x64xf32>
    %289 = math.tanh %288 : vector<8x64xf32>
    %290 = arith.mulf %286, %270 : vector<8x64xf32>
    %291 = arith.mulf %285, %289 : vector<8x64xf32>
    %292 = arith.addf %290, %291 : vector<8x64xf32>
    %293 = math.tanh %292 : vector<8x64xf32>
    %294 = arith.mulf %287, %293 : vector<8x64xf32>
    %295 = vector.extract_strided_slice %189 {offsets = [40, 0], sizes = [8, 256], strides = [1, 1]} : vector<64x256xf32> to vector<8x256xf32>
    %296 = vector.extract_strided_slice %189 {offsets = [16, 0], sizes = [8, 256], strides = [1, 1]} : vector<64x256xf32> to vector<8x256xf32>
    %297 = arith.select %4, %295, %296 : vector<8x256xi1>, vector<8x256xf32>
    %298 = arith.truncf %294 : vector<8x64xf32> to vector<8x64xbf16>
    %cst_107 = arith.constant dense<0.000000e+00> : vector<8x256xf32>
    %299 = tpu.matmul %298, %190, %cst_107 {dimension_numbers = #tpu.dot_dimension_numbers<[1], [0], [0], [1], [0, 0, 1, 1], [], []>} : vector<8x64xbf16>, vector<64x256xbf16>, vector<8x256xf32> -> vector<8x256xf32>
    %300 = arith.addf %297, %299 : vector<8x256xf32>
    %301 = vector.extract_strided_slice %300 {offsets = [0, 0], sizes = [8, 192], strides = [1, 1]} : vector<8x256xf32> to vector<8x192xf32>
    %302 = math.tanh %301 : vector<8x192xf32>
    %cst_108 = arith.constant 5.000000e-01 : f32
    %303 = vector.broadcast %cst_108 : f32 to vector<8x192xf32>
    %304 = arith.mulf %302, %303 : vector<8x192xf32>
    %cst_109 = arith.constant 5.000000e-01 : f32
    %305 = vector.broadcast %cst_109 : f32 to vector<8x192xf32>
    %306 = arith.addf %304, %305 : vector<8x192xf32>
    %307 = vector.extract_strided_slice %306 {offsets = [0, 0], sizes = [8, 64], strides = [1, 1]} : vector<8x192xf32> to vector<8x64xf32>
    %308 = vector.extract_strided_slice %306 {offsets = [0, 64], sizes = [8, 64], strides = [1, 1]} : vector<8x192xf32> to vector<8x64xf32>
    %309 = vector.extract_strided_slice %306 {offsets = [0, 128], sizes = [8, 64], strides = [1, 1]} : vector<8x192xf32> to vector<8x64xf32>
    %310 = vector.extract_strided_slice %300 {offsets = [0, 192], sizes = [8, 64], strides = [1, 1]} : vector<8x256xf32> to vector<8x64xf32>
    %311 = math.tanh %310 : vector<8x64xf32>
    %312 = arith.mulf %308, %292 : vector<8x64xf32>
    %313 = arith.mulf %307, %311 : vector<8x64xf32>
    %314 = arith.addf %312, %313 : vector<8x64xf32>
    %315 = math.tanh %314 : vector<8x64xf32>
    %316 = arith.mulf %309, %315 : vector<8x64xf32>
    %317 = vector.extract_strided_slice %189 {offsets = [48, 0], sizes = [8, 256], strides = [1, 1]} : vector<64x256xf32> to vector<8x256xf32>
    %318 = vector.extract_strided_slice %189 {offsets = [8, 0], sizes = [8, 256], strides = [1, 1]} : vector<64x256xf32> to vector<8x256xf32>
    %319 = arith.select %4, %317, %318 : vector<8x256xi1>, vector<8x256xf32>
    %320 = arith.truncf %316 : vector<8x64xf32> to vector<8x64xbf16>
    %cst_110 = arith.constant dense<0.000000e+00> : vector<8x256xf32>
    %321 = tpu.matmul %320, %190, %cst_110 {dimension_numbers = #tpu.dot_dimension_numbers<[1], [0], [0], [1], [0, 0, 1, 1], [], []>} : vector<8x64xbf16>, vector<64x256xbf16>, vector<8x256xf32> -> vector<8x256xf32>
    %322 = arith.addf %319, %321 : vector<8x256xf32>
    %323 = vector.extract_strided_slice %322 {offsets = [0, 0], sizes = [8, 192], strides = [1, 1]} : vector<8x256xf32> to vector<8x192xf32>
    %324 = math.tanh %323 : vector<8x192xf32>
    %cst_111 = arith.constant 5.000000e-01 : f32
    %325 = vector.broadcast %cst_111 : f32 to vector<8x192xf32>
    %326 = arith.mulf %324, %325 : vector<8x192xf32>
    %cst_112 = arith.constant 5.000000e-01 : f32
    %327 = vector.broadcast %cst_112 : f32 to vector<8x192xf32>
    %328 = arith.addf %326, %327 : vector<8x192xf32>
    %329 = vector.extract_strided_slice %328 {offsets = [0, 0], sizes = [8, 64], strides = [1, 1]} : vector<8x192xf32> to vector<8x64xf32>
    %330 = vector.extract_strided_slice %328 {offsets = [0, 64], sizes = [8, 64], strides = [1, 1]} : vector<8x192xf32> to vector<8x64xf32>
    %331 = vector.extract_strided_slice %328 {offsets = [0, 128], sizes = [8, 64], strides = [1, 1]} : vector<8x192xf32> to vector<8x64xf32>
    %332 = vector.extract_strided_slice %322 {offsets = [0, 192], sizes = [8, 64], strides = [1, 1]} : vector<8x256xf32> to vector<8x64xf32>
    %333 = math.tanh %332 : vector<8x64xf32>
    %334 = arith.mulf %330, %314 : vector<8x64xf32>
    %335 = arith.mulf %329, %333 : vector<8x64xf32>
    %336 = arith.addf %334, %335 : vector<8x64xf32>
    %337 = math.tanh %336 : vector<8x64xf32>
    %338 = arith.mulf %331, %337 : vector<8x64xf32>
    %339 = vector.extract_strided_slice %189 {offsets = [56, 0], sizes = [8, 256], strides = [1, 1]} : vector<64x256xf32> to vector<8x256xf32>
    %340 = vector.extract_strided_slice %189 {offsets = [0, 0], sizes = [8, 256], strides = [1, 1]} : vector<64x256xf32> to vector<8x256xf32>
    %341 = arith.select %4, %339, %340 : vector<8x256xi1>, vector<8x256xf32>
    %342 = arith.truncf %338 : vector<8x64xf32> to vector<8x64xbf16>
    %cst_113 = arith.constant dense<0.000000e+00> : vector<8x256xf32>
    %343 = tpu.matmul %342, %190, %cst_113 {dimension_numbers = #tpu.dot_dimension_numbers<[1], [0], [0], [1], [0, 0, 1, 1], [], []>} : vector<8x64xbf16>, vector<64x256xbf16>, vector<8x256xf32> -> vector<8x256xf32>
    %344 = arith.addf %341, %343 : vector<8x256xf32>
    %345 = vector.extract_strided_slice %344 {offsets = [0, 0], sizes = [8, 192], strides = [1, 1]} : vector<8x256xf32> to vector<8x192xf32>
    %346 = math.tanh %345 : vector<8x192xf32>
    %cst_114 = arith.constant 5.000000e-01 : f32
    %347 = vector.broadcast %cst_114 : f32 to vector<8x192xf32>
    %348 = arith.mulf %346, %347 : vector<8x192xf32>
    %cst_115 = arith.constant 5.000000e-01 : f32
    %349 = vector.broadcast %cst_115 : f32 to vector<8x192xf32>
    %350 = arith.addf %348, %349 : vector<8x192xf32>
    %351 = vector.extract_strided_slice %350 {offsets = [0, 0], sizes = [8, 64], strides = [1, 1]} : vector<8x192xf32> to vector<8x64xf32>
    %352 = vector.extract_strided_slice %350 {offsets = [0, 64], sizes = [8, 64], strides = [1, 1]} : vector<8x192xf32> to vector<8x64xf32>
    %353 = vector.extract_strided_slice %350 {offsets = [0, 128], sizes = [8, 64], strides = [1, 1]} : vector<8x192xf32> to vector<8x64xf32>
    %354 = vector.extract_strided_slice %344 {offsets = [0, 192], sizes = [8, 64], strides = [1, 1]} : vector<8x256xf32> to vector<8x64xf32>
    %355 = math.tanh %354 : vector<8x64xf32>
    %356 = arith.mulf %352, %336 : vector<8x64xf32>
    %357 = arith.mulf %351, %355 : vector<8x64xf32>
    %358 = arith.addf %356, %357 : vector<8x64xf32>
    %359 = math.tanh %358 : vector<8x64xf32>
    %360 = arith.mulf %353, %359 : vector<8x64xf32>
    %361 = arith.select %7, %206, %360 : vector<8x64xi1>, vector<8x64xf32>
    %362 = arith.select %7, %228, %338 : vector<8x64xi1>, vector<8x64xf32>
    %363 = arith.select %7, %250, %316 : vector<8x64xi1>, vector<8x64xf32>
    %364 = arith.select %7, %272, %294 : vector<8x64xi1>, vector<8x64xf32>
    %365 = arith.select %7, %294, %272 : vector<8x64xi1>, vector<8x64xf32>
    %366 = arith.select %7, %316, %250 : vector<8x64xi1>, vector<8x64xf32>
    %367 = arith.select %7, %338, %228 : vector<8x64xi1>, vector<8x64xf32>
    %368 = arith.select %7, %360, %206 : vector<8x64xi1>, vector<8x64xf32>
    %369 = tpu.concatenate %361, %362, %363, %364, %365, %366, %367, %368 in 0 : vector<8x64xf32>, vector<8x64xf32>, vector<8x64xf32>, vector<8x64xf32>, vector<8x64xf32>, vector<8x64xf32>, vector<8x64xf32>, vector<8x64xf32> -> vector<64x64xf32>
    %370 = arith.truncf %369 : vector<64x64xf32> to vector<64x64xbf16>
    %c64 = arith.constant 64 : index
    %c0_116 = arith.constant 0 : index
    %371 = vector.load %arg2[%c64, %c0_116] : memref<288x256xbf16, #tpu.memory_space<vmem>>, vector<64x256xbf16>
    %cst_117 = arith.constant dense<0.000000e+00> : vector<64x256xf32>
    %372 = tpu.matmul %370, %371, %cst_117 {dimension_numbers = #tpu.dot_dimension_numbers<[1], [0], [0], [1], [0, 0, 1, 1], [], []>} : vector<64x64xbf16>, vector<64x256xbf16>, vector<64x256xf32> -> vector<64x256xf32>
    %c0_118 = arith.constant 0 : index
    %c0_119 = arith.constant 0 : index
    %373 = vector.load %arg3[%c0_118, %c0_119] : memref<8x256xf32, #tpu.memory_space<vmem>>, vector<1x256xf32>
    %374 = vector.broadcast %373 : vector<1x256xf32> to vector<64x256xf32>
    %375 = arith.addf %372, %374 : vector<64x256xf32>
    %c128 = arith.constant 128 : index
    %c0_120 = arith.constant 0 : index
    %376 = vector.load %arg2[%c128, %c0_120] : memref<288x256xbf16, #tpu.memory_space<vmem>>, vector<64x256xbf16>
    %377 = vector.extract_strided_slice %375 {offsets = [0, 0], sizes = [8, 256], strides = [1, 1]} : vector<64x256xf32> to vector<8x256xf32>
    %378 = vector.extract_strided_slice %375 {offsets = [56, 0], sizes = [8, 256], strides = [1, 1]} : vector<64x256xf32> to vector<8x256xf32>
    %379 = arith.select %4, %377, %378 : vector<8x256xi1>, vector<8x256xf32>
    %380 = vector.extract_strided_slice %379 {offsets = [0, 0], sizes = [8, 192], strides = [1, 1]} : vector<8x256xf32> to vector<8x192xf32>
    %381 = math.tanh %380 : vector<8x192xf32>
    %cst_121 = arith.constant 5.000000e-01 : f32
    %382 = vector.broadcast %cst_121 : f32 to vector<8x192xf32>
    %383 = arith.mulf %381, %382 : vector<8x192xf32>
    %cst_122 = arith.constant 5.000000e-01 : f32
    %384 = vector.broadcast %cst_122 : f32 to vector<8x192xf32>
    %385 = arith.addf %383, %384 : vector<8x192xf32>
    %386 = vector.extract_strided_slice %385 {offsets = [0, 0], sizes = [8, 64], strides = [1, 1]} : vector<8x192xf32> to vector<8x64xf32>
    %387 = vector.extract_strided_slice %385 {offsets = [0, 128], sizes = [8, 64], strides = [1, 1]} : vector<8x192xf32> to vector<8x64xf32>
    %388 = vector.extract_strided_slice %379 {offsets = [0, 192], sizes = [8, 64], strides = [1, 1]} : vector<8x256xf32> to vector<8x64xf32>
    %389 = math.tanh %388 : vector<8x64xf32>
    %390 = arith.mulf %386, %389 : vector<8x64xf32>
    %391 = math.tanh %390 : vector<8x64xf32>
    %392 = arith.mulf %387, %391 : vector<8x64xf32>
    %393 = vector.extract_strided_slice %375 {offsets = [8, 0], sizes = [8, 256], strides = [1, 1]} : vector<64x256xf32> to vector<8x256xf32>
    %394 = vector.extract_strided_slice %375 {offsets = [48, 0], sizes = [8, 256], strides = [1, 1]} : vector<64x256xf32> to vector<8x256xf32>
    %395 = arith.select %4, %393, %394 : vector<8x256xi1>, vector<8x256xf32>
    %396 = arith.truncf %392 : vector<8x64xf32> to vector<8x64xbf16>
    %cst_123 = arith.constant dense<0.000000e+00> : vector<8x256xf32>
    %397 = tpu.matmul %396, %376, %cst_123 {dimension_numbers = #tpu.dot_dimension_numbers<[1], [0], [0], [1], [0, 0, 1, 1], [], []>} : vector<8x64xbf16>, vector<64x256xbf16>, vector<8x256xf32> -> vector<8x256xf32>
    %398 = arith.addf %395, %397 : vector<8x256xf32>
    %399 = vector.extract_strided_slice %398 {offsets = [0, 0], sizes = [8, 192], strides = [1, 1]} : vector<8x256xf32> to vector<8x192xf32>
    %400 = math.tanh %399 : vector<8x192xf32>
    %cst_124 = arith.constant 5.000000e-01 : f32
    %401 = vector.broadcast %cst_124 : f32 to vector<8x192xf32>
    %402 = arith.mulf %400, %401 : vector<8x192xf32>
    %cst_125 = arith.constant 5.000000e-01 : f32
    %403 = vector.broadcast %cst_125 : f32 to vector<8x192xf32>
    %404 = arith.addf %402, %403 : vector<8x192xf32>
    %405 = vector.extract_strided_slice %404 {offsets = [0, 0], sizes = [8, 64], strides = [1, 1]} : vector<8x192xf32> to vector<8x64xf32>
    %406 = vector.extract_strided_slice %404 {offsets = [0, 64], sizes = [8, 64], strides = [1, 1]} : vector<8x192xf32> to vector<8x64xf32>
    %407 = vector.extract_strided_slice %404 {offsets = [0, 128], sizes = [8, 64], strides = [1, 1]} : vector<8x192xf32> to vector<8x64xf32>
    %408 = vector.extract_strided_slice %398 {offsets = [0, 192], sizes = [8, 64], strides = [1, 1]} : vector<8x256xf32> to vector<8x64xf32>
    %409 = math.tanh %408 : vector<8x64xf32>
    %410 = arith.mulf %406, %390 : vector<8x64xf32>
    %411 = arith.mulf %405, %409 : vector<8x64xf32>
    %412 = arith.addf %410, %411 : vector<8x64xf32>
    %413 = math.tanh %412 : vector<8x64xf32>
    %414 = arith.mulf %407, %413 : vector<8x64xf32>
    %415 = vector.extract_strided_slice %375 {offsets = [16, 0], sizes = [8, 256], strides = [1, 1]} : vector<64x256xf32> to vector<8x256xf32>
    %416 = vector.extract_strided_slice %375 {offsets = [40, 0], sizes = [8, 256], strides = [1, 1]} : vector<64x256xf32> to vector<8x256xf32>
    %417 = arith.select %4, %415, %416 : vector<8x256xi1>, vector<8x256xf32>
    %418 = arith.truncf %414 : vector<8x64xf32> to vector<8x64xbf16>
    %cst_126 = arith.constant dense<0.000000e+00> : vector<8x256xf32>
    %419 = tpu.matmul %418, %376, %cst_126 {dimension_numbers = #tpu.dot_dimension_numbers<[1], [0], [0], [1], [0, 0, 1, 1], [], []>} : vector<8x64xbf16>, vector<64x256xbf16>, vector<8x256xf32> -> vector<8x256xf32>
    %420 = arith.addf %417, %419 : vector<8x256xf32>
    %421 = vector.extract_strided_slice %420 {offsets = [0, 0], sizes = [8, 192], strides = [1, 1]} : vector<8x256xf32> to vector<8x192xf32>
    %422 = math.tanh %421 : vector<8x192xf32>
    %cst_127 = arith.constant 5.000000e-01 : f32
    %423 = vector.broadcast %cst_127 : f32 to vector<8x192xf32>
    %424 = arith.mulf %422, %423 : vector<8x192xf32>
    %cst_128 = arith.constant 5.000000e-01 : f32
    %425 = vector.broadcast %cst_128 : f32 to vector<8x192xf32>
    %426 = arith.addf %424, %425 : vector<8x192xf32>
    %427 = vector.extract_strided_slice %426 {offsets = [0, 0], sizes = [8, 64], strides = [1, 1]} : vector<8x192xf32> to vector<8x64xf32>
    %428 = vector.extract_strided_slice %426 {offsets = [0, 64], sizes = [8, 64], strides = [1, 1]} : vector<8x192xf32> to vector<8x64xf32>
    %429 = vector.extract_strided_slice %426 {offsets = [0, 128], sizes = [8, 64], strides = [1, 1]} : vector<8x192xf32> to vector<8x64xf32>
    %430 = vector.extract_strided_slice %420 {offsets = [0, 192], sizes = [8, 64], strides = [1, 1]} : vector<8x256xf32> to vector<8x64xf32>
    %431 = math.tanh %430 : vector<8x64xf32>
    %432 = arith.mulf %428, %412 : vector<8x64xf32>
    %433 = arith.mulf %427, %431 : vector<8x64xf32>
    %434 = arith.addf %432, %433 : vector<8x64xf32>
    %435 = math.tanh %434 : vector<8x64xf32>
    %436 = arith.mulf %429, %435 : vector<8x64xf32>
    %437 = vector.extract_strided_slice %375 {offsets = [24, 0], sizes = [8, 256], strides = [1, 1]} : vector<64x256xf32> to vector<8x256xf32>
    %438 = vector.extract_strided_slice %375 {offsets = [32, 0], sizes = [8, 256], strides = [1, 1]} : vector<64x256xf32> to vector<8x256xf32>
    %439 = arith.select %4, %437, %438 : vector<8x256xi1>, vector<8x256xf32>
    %440 = arith.truncf %436 : vector<8x64xf32> to vector<8x64xbf16>
    %cst_129 = arith.constant dense<0.000000e+00> : vector<8x256xf32>
    %441 = tpu.matmul %440, %376, %cst_129 {dimension_numbers = #tpu.dot_dimension_numbers<[1], [0], [0], [1], [0, 0, 1, 1], [], []>} : vector<8x64xbf16>, vector<64x256xbf16>, vector<8x256xf32> -> vector<8x256xf32>
    %442 = arith.addf %439, %441 : vector<8x256xf32>
    %443 = vector.extract_strided_slice %442 {offsets = [0, 0], sizes = [8, 192], strides = [1, 1]} : vector<8x256xf32> to vector<8x192xf32>
    %444 = math.tanh %443 : vector<8x192xf32>
    %cst_130 = arith.constant 5.000000e-01 : f32
    %445 = vector.broadcast %cst_130 : f32 to vector<8x192xf32>
    %446 = arith.mulf %444, %445 : vector<8x192xf32>
    %cst_131 = arith.constant 5.000000e-01 : f32
    %447 = vector.broadcast %cst_131 : f32 to vector<8x192xf32>
    %448 = arith.addf %446, %447 : vector<8x192xf32>
    %449 = vector.extract_strided_slice %448 {offsets = [0, 0], sizes = [8, 64], strides = [1, 1]} : vector<8x192xf32> to vector<8x64xf32>
    %450 = vector.extract_strided_slice %448 {offsets = [0, 64], sizes = [8, 64], strides = [1, 1]} : vector<8x192xf32> to vector<8x64xf32>
    %451 = vector.extract_strided_slice %448 {offsets = [0, 128], sizes = [8, 64], strides = [1, 1]} : vector<8x192xf32> to vector<8x64xf32>
    %452 = vector.extract_strided_slice %442 {offsets = [0, 192], sizes = [8, 64], strides = [1, 1]} : vector<8x256xf32> to vector<8x64xf32>
    %453 = math.tanh %452 : vector<8x64xf32>
    %454 = arith.mulf %450, %434 : vector<8x64xf32>
    %455 = arith.mulf %449, %453 : vector<8x64xf32>
    %456 = arith.addf %454, %455 : vector<8x64xf32>
    %457 = math.tanh %456 : vector<8x64xf32>
    %458 = arith.mulf %451, %457 : vector<8x64xf32>
    %459 = vector.extract_strided_slice %375 {offsets = [32, 0], sizes = [8, 256], strides = [1, 1]} : vector<64x256xf32> to vector<8x256xf32>
    %460 = vector.extract_strided_slice %375 {offsets = [24, 0], sizes = [8, 256], strides = [1, 1]} : vector<64x256xf32> to vector<8x256xf32>
    %461 = arith.select %4, %459, %460 : vector<8x256xi1>, vector<8x256xf32>
    %462 = arith.truncf %458 : vector<8x64xf32> to vector<8x64xbf16>
    %cst_132 = arith.constant dense<0.000000e+00> : vector<8x256xf32>
    %463 = tpu.matmul %462, %376, %cst_132 {dimension_numbers = #tpu.dot_dimension_numbers<[1], [0], [0], [1], [0, 0, 1, 1], [], []>} : vector<8x64xbf16>, vector<64x256xbf16>, vector<8x256xf32> -> vector<8x256xf32>
    %464 = arith.addf %461, %463 : vector<8x256xf32>
    %465 = vector.extract_strided_slice %464 {offsets = [0, 0], sizes = [8, 192], strides = [1, 1]} : vector<8x256xf32> to vector<8x192xf32>
    %466 = math.tanh %465 : vector<8x192xf32>
    %cst_133 = arith.constant 5.000000e-01 : f32
    %467 = vector.broadcast %cst_133 : f32 to vector<8x192xf32>
    %468 = arith.mulf %466, %467 : vector<8x192xf32>
    %cst_134 = arith.constant 5.000000e-01 : f32
    %469 = vector.broadcast %cst_134 : f32 to vector<8x192xf32>
    %470 = arith.addf %468, %469 : vector<8x192xf32>
    %471 = vector.extract_strided_slice %470 {offsets = [0, 0], sizes = [8, 64], strides = [1, 1]} : vector<8x192xf32> to vector<8x64xf32>
    %472 = vector.extract_strided_slice %470 {offsets = [0, 64], sizes = [8, 64], strides = [1, 1]} : vector<8x192xf32> to vector<8x64xf32>
    %473 = vector.extract_strided_slice %470 {offsets = [0, 128], sizes = [8, 64], strides = [1, 1]} : vector<8x192xf32> to vector<8x64xf32>
    %474 = vector.extract_strided_slice %464 {offsets = [0, 192], sizes = [8, 64], strides = [1, 1]} : vector<8x256xf32> to vector<8x64xf32>
    %475 = math.tanh %474 : vector<8x64xf32>
    %476 = arith.mulf %472, %456 : vector<8x64xf32>
    %477 = arith.mulf %471, %475 : vector<8x64xf32>
    %478 = arith.addf %476, %477 : vector<8x64xf32>
    %479 = math.tanh %478 : vector<8x64xf32>
    %480 = arith.mulf %473, %479 : vector<8x64xf32>
    %481 = vector.extract_strided_slice %375 {offsets = [40, 0], sizes = [8, 256], strides = [1, 1]} : vector<64x256xf32> to vector<8x256xf32>
    %482 = vector.extract_strided_slice %375 {offsets = [16, 0], sizes = [8, 256], strides = [1, 1]} : vector<64x256xf32> to vector<8x256xf32>
    %483 = arith.select %4, %481, %482 : vector<8x256xi1>, vector<8x256xf32>
    %484 = arith.truncf %480 : vector<8x64xf32> to vector<8x64xbf16>
    %cst_135 = arith.constant dense<0.000000e+00> : vector<8x256xf32>
    %485 = tpu.matmul %484, %376, %cst_135 {dimension_numbers = #tpu.dot_dimension_numbers<[1], [0], [0], [1], [0, 0, 1, 1], [], []>} : vector<8x64xbf16>, vector<64x256xbf16>, vector<8x256xf32> -> vector<8x256xf32>
    %486 = arith.addf %483, %485 : vector<8x256xf32>
    %487 = vector.extract_strided_slice %486 {offsets = [0, 0], sizes = [8, 192], strides = [1, 1]} : vector<8x256xf32> to vector<8x192xf32>
    %488 = math.tanh %487 : vector<8x192xf32>
    %cst_136 = arith.constant 5.000000e-01 : f32
    %489 = vector.broadcast %cst_136 : f32 to vector<8x192xf32>
    %490 = arith.mulf %488, %489 : vector<8x192xf32>
    %cst_137 = arith.constant 5.000000e-01 : f32
    %491 = vector.broadcast %cst_137 : f32 to vector<8x192xf32>
    %492 = arith.addf %490, %491 : vector<8x192xf32>
    %493 = vector.extract_strided_slice %492 {offsets = [0, 0], sizes = [8, 64], strides = [1, 1]} : vector<8x192xf32> to vector<8x64xf32>
    %494 = vector.extract_strided_slice %492 {offsets = [0, 64], sizes = [8, 64], strides = [1, 1]} : vector<8x192xf32> to vector<8x64xf32>
    %495 = vector.extract_strided_slice %492 {offsets = [0, 128], sizes = [8, 64], strides = [1, 1]} : vector<8x192xf32> to vector<8x64xf32>
    %496 = vector.extract_strided_slice %486 {offsets = [0, 192], sizes = [8, 64], strides = [1, 1]} : vector<8x256xf32> to vector<8x64xf32>
    %497 = math.tanh %496 : vector<8x64xf32>
    %498 = arith.mulf %494, %478 : vector<8x64xf32>
    %499 = arith.mulf %493, %497 : vector<8x64xf32>
    %500 = arith.addf %498, %499 : vector<8x64xf32>
    %501 = math.tanh %500 : vector<8x64xf32>
    %502 = arith.mulf %495, %501 : vector<8x64xf32>
    %503 = vector.extract_strided_slice %375 {offsets = [48, 0], sizes = [8, 256], strides = [1, 1]} : vector<64x256xf32> to vector<8x256xf32>
    %504 = vector.extract_strided_slice %375 {offsets = [8, 0], sizes = [8, 256], strides = [1, 1]} : vector<64x256xf32> to vector<8x256xf32>
    %505 = arith.select %4, %503, %504 : vector<8x256xi1>, vector<8x256xf32>
    %506 = arith.truncf %502 : vector<8x64xf32> to vector<8x64xbf16>
    %cst_138 = arith.constant dense<0.000000e+00> : vector<8x256xf32>
    %507 = tpu.matmul %506, %376, %cst_138 {dimension_numbers = #tpu.dot_dimension_numbers<[1], [0], [0], [1], [0, 0, 1, 1], [], []>} : vector<8x64xbf16>, vector<64x256xbf16>, vector<8x256xf32> -> vector<8x256xf32>
    %508 = arith.addf %505, %507 : vector<8x256xf32>
    %509 = vector.extract_strided_slice %508 {offsets = [0, 0], sizes = [8, 192], strides = [1, 1]} : vector<8x256xf32> to vector<8x192xf32>
    %510 = math.tanh %509 : vector<8x192xf32>
    %cst_139 = arith.constant 5.000000e-01 : f32
    %511 = vector.broadcast %cst_139 : f32 to vector<8x192xf32>
    %512 = arith.mulf %510, %511 : vector<8x192xf32>
    %cst_140 = arith.constant 5.000000e-01 : f32
    %513 = vector.broadcast %cst_140 : f32 to vector<8x192xf32>
    %514 = arith.addf %512, %513 : vector<8x192xf32>
    %515 = vector.extract_strided_slice %514 {offsets = [0, 0], sizes = [8, 64], strides = [1, 1]} : vector<8x192xf32> to vector<8x64xf32>
    %516 = vector.extract_strided_slice %514 {offsets = [0, 64], sizes = [8, 64], strides = [1, 1]} : vector<8x192xf32> to vector<8x64xf32>
    %517 = vector.extract_strided_slice %514 {offsets = [0, 128], sizes = [8, 64], strides = [1, 1]} : vector<8x192xf32> to vector<8x64xf32>
    %518 = vector.extract_strided_slice %508 {offsets = [0, 192], sizes = [8, 64], strides = [1, 1]} : vector<8x256xf32> to vector<8x64xf32>
    %519 = math.tanh %518 : vector<8x64xf32>
    %520 = arith.mulf %516, %500 : vector<8x64xf32>
    %521 = arith.mulf %515, %519 : vector<8x64xf32>
    %522 = arith.addf %520, %521 : vector<8x64xf32>
    %523 = math.tanh %522 : vector<8x64xf32>
    %524 = arith.mulf %517, %523 : vector<8x64xf32>
    %525 = vector.extract_strided_slice %375 {offsets = [56, 0], sizes = [8, 256], strides = [1, 1]} : vector<64x256xf32> to vector<8x256xf32>
    %526 = vector.extract_strided_slice %375 {offsets = [0, 0], sizes = [8, 256], strides = [1, 1]} : vector<64x256xf32> to vector<8x256xf32>
    %527 = arith.select %4, %525, %526 : vector<8x256xi1>, vector<8x256xf32>
    %528 = arith.truncf %524 : vector<8x64xf32> to vector<8x64xbf16>
    %cst_141 = arith.constant dense<0.000000e+00> : vector<8x256xf32>
    %529 = tpu.matmul %528, %376, %cst_141 {dimension_numbers = #tpu.dot_dimension_numbers<[1], [0], [0], [1], [0, 0, 1, 1], [], []>} : vector<8x64xbf16>, vector<64x256xbf16>, vector<8x256xf32> -> vector<8x256xf32>
    %530 = arith.addf %527, %529 : vector<8x256xf32>
    %531 = vector.extract_strided_slice %530 {offsets = [0, 0], sizes = [8, 192], strides = [1, 1]} : vector<8x256xf32> to vector<8x192xf32>
    %532 = math.tanh %531 : vector<8x192xf32>
    %cst_142 = arith.constant 5.000000e-01 : f32
    %533 = vector.broadcast %cst_142 : f32 to vector<8x192xf32>
    %534 = arith.mulf %532, %533 : vector<8x192xf32>
    %cst_143 = arith.constant 5.000000e-01 : f32
    %535 = vector.broadcast %cst_143 : f32 to vector<8x192xf32>
    %536 = arith.addf %534, %535 : vector<8x192xf32>
    %537 = vector.extract_strided_slice %536 {offsets = [0, 0], sizes = [8, 64], strides = [1, 1]} : vector<8x192xf32> to vector<8x64xf32>
    %538 = vector.extract_strided_slice %536 {offsets = [0, 64], sizes = [8, 64], strides = [1, 1]} : vector<8x192xf32> to vector<8x64xf32>
    %539 = vector.extract_strided_slice %536 {offsets = [0, 128], sizes = [8, 64], strides = [1, 1]} : vector<8x192xf32> to vector<8x64xf32>
    %540 = vector.extract_strided_slice %530 {offsets = [0, 192], sizes = [8, 64], strides = [1, 1]} : vector<8x256xf32> to vector<8x64xf32>
    %541 = math.tanh %540 : vector<8x64xf32>
    %542 = arith.mulf %538, %522 : vector<8x64xf32>
    %543 = arith.mulf %537, %541 : vector<8x64xf32>
    %544 = arith.addf %542, %543 : vector<8x64xf32>
    %545 = math.tanh %544 : vector<8x64xf32>
    %546 = arith.mulf %539, %545 : vector<8x64xf32>
    %547 = arith.select %7, %392, %546 : vector<8x64xi1>, vector<8x64xf32>
    %548 = arith.select %7, %414, %524 : vector<8x64xi1>, vector<8x64xf32>
    %549 = arith.select %7, %436, %502 : vector<8x64xi1>, vector<8x64xf32>
    %550 = arith.select %7, %458, %480 : vector<8x64xi1>, vector<8x64xf32>
    %551 = arith.select %7, %480, %458 : vector<8x64xi1>, vector<8x64xf32>
    %552 = arith.select %7, %502, %436 : vector<8x64xi1>, vector<8x64xf32>
    %553 = arith.select %7, %524, %414 : vector<8x64xi1>, vector<8x64xf32>
    %554 = arith.select %7, %546, %392 : vector<8x64xi1>, vector<8x64xf32>
    %555 = tpu.concatenate %547, %548, %549, %550, %551, %552, %553, %554 in 0 : vector<8x64xf32>, vector<8x64xf32>, vector<8x64xf32>, vector<8x64xf32>, vector<8x64xf32>, vector<8x64xf32>, vector<8x64xf32>, vector<8x64xf32> -> vector<64x64xf32>
    %556 = arith.truncf %555 : vector<64x64xf32> to vector<64x64xbf16>
    %c192 = arith.constant 192 : index
    %c0_144 = arith.constant 0 : index
    %557 = vector.load %arg2[%c192, %c0_144] : memref<288x256xbf16, #tpu.memory_space<vmem>>, vector<64x32xbf16>
    %cst_145 = arith.constant dense<0.000000e+00> : vector<64x32xf32>
    %558 = tpu.matmul %556, %557, %cst_145 {dimension_numbers = #tpu.dot_dimension_numbers<[1], [0], [0], [1], [0, 0, 1, 1], [], []>} : vector<64x64xbf16>, vector<64x32xbf16>, vector<64x32xf32> -> vector<64x32xf32>
    %c1_146 = arith.constant 1 : index
    %c0_147 = arith.constant 0 : index
    %559 = vector.load %arg3[%c1_146, %c0_147] : memref<8x256xf32, #tpu.memory_space<vmem>>, vector<1x32xf32>
    %560 = vector.broadcast %559 : vector<1x32xf32> to vector<64x32xf32>
    %561 = arith.addf %558, %560 : vector<64x32xf32>
    %cst_148 = arith.constant 0.000000e+00 : f32
    %562 = vector.broadcast %cst_148 : f32 to vector<64x32xf32>
    %563 = arith.maximumf %561, %562 : vector<64x32xf32>
    %564 = arith.truncf %563 : vector<64x32xf32> to vector<64x32xbf16>
    %c256 = arith.constant 256 : index
    %c0_149 = arith.constant 0 : index
    %565 = vector.load %arg2[%c256, %c0_149] : memref<288x256xbf16, #tpu.memory_space<vmem>>, vector<32x128xbf16>
    %cst_150 = arith.constant dense<0.000000e+00> : vector<64x128xf32>
    %566 = tpu.matmul %564, %565, %cst_150 {dimension_numbers = #tpu.dot_dimension_numbers<[1], [0], [0], [1], [0, 0, 1, 1], [], []>} : vector<64x32xbf16>, vector<32x128xbf16>, vector<64x128xf32> -> vector<64x128xf32>
    %c2_151 = arith.constant 2 : index
    %c0_152 = arith.constant 0 : index
    %567 = vector.load %arg3[%c2_151, %c0_152] : memref<8x256xf32, #tpu.memory_space<vmem>>, vector<1x128xf32>
    %568 = vector.broadcast %567 : vector<1x128xf32> to vector<64x128xf32>
    %569 = arith.addf %566, %568 : vector<64x128xf32>
    %c0_153 = arith.constant 0 : index
    %c0_154 = arith.constant 0 : index
    %570 = vector.load %arg4[%c0_153, %c0_154] : memref<64x128xf32, #tpu.memory_space<vmem>>, vector<64x128xf32>
    tpu.vector_store %arg4[%c0_153, %c0_154], %569 {strides = array<i32>} : memref<64x128xf32, #tpu.memory_space<vmem>>, vector<64x128xf32>,
    return
  }
}

</mosaic_0001>

<bundles_post_ra>
// kernel: _lambda_.1
= control target key start
LH: loop header
LB: loop body
LE: loop exit
PB: predicated region body
PF: predicated region fallthrough
CT: control target
= control target key end

     0   :  { %9 = vsyncpa [#allocation5], 0  ;;  %s3324_s0 = inlined_call_operand.hbm [shape: s32[2,16], index: 0, kind: input, shape index: {}]   ;;  %s3325_s1 = inlined_call_operand.hbm [shape: f32[128,256], index: 1, kind: input, shape index: {}]   ;;  %s3326_s2 = inlined_call_operand.hbm [shape: bf16[288,256], index: 2, kind: input, shape index: {}]   ;;  %s3327_s3 = inlined_call_operand.hbm [shape: f32[8,256], index: 3, kind: input, shape index: {}]   ;;  %s3328_s4 = inlined_call_operand.vmem [shape: f32[64,128], index: 4, kind: output, shape index: {}]  }
   0x1   :  { %10 = vsyncpa [#allocation4], 0 }
   0x2   :  { %11 = vsyncpa [#allocation8], 0  ;;  %s2325_s15 = smov [#allocation7]  }
   0x3   :  { %s37_s16 = sshll.u32 %s2325_s15, 4  ;;  %s38_s16 = int_to_ptr.vmem [resolvable:$true] %s37_s16 }
   0x4   :  { %s2259_s17 = scalar_lea.vmem %s38_s16, 4608  ;;  %p2264_p1 = scmp.lt.s32.totalorder %s38_s16, %s38_s16 }
   0x5   :  { %p2260_p0 = scmp.ne.s32.totalorder %s38_s16, %s2259_s17  ;;  %p2265_p2 = scmp.lt.s32.totalorder %s2259_s17, %s2259_s17 }
   0x7   :  { %p2266_p3 = por %p2265_p2, %p2264_p1 }
   0x9   :  { %p2267_p4 = pnand %p2266_p3, %p2260_p0 }
   0xb   :  { %2270 = shalt.err (!%p2267_p4)
}
   0xc   :  { %s2326_s18 = smov 128   ;;  %s2327_s19 = smov 8  }
   0xd   :  { %43 = dma.hbm_to_vmem [thread:$0]  %s3326_s2, 4608, %s38_s16, [#allocation8], %s2326_s18, %s2326_s18, %s2327_s19  }
   0xe   :  { %s2328_s22 = smov [#allocation3]   ;;  %s2329_s25 = smov [#allocation6]  }
   0xf   :  { %19 = dma.hbm_to_smem %s3324_s0, 32, %s2328_s22, [#allocation5]  }
  0x10   :  { %s25_s26 = sshll.u32 %s2329_s25, 4  ;;  %s26_s26 = int_to_ptr.vmem [resolvable:$true] %s25_s26 }
  0x11   :  { %s2287_s27 = scalar_lea.vmem %s26_s26, 4096  ;;  %p2292_p6 = scmp.lt.s32.totalorder %s26_s26, %s26_s26 }
  0x12   :  { %p2288_p5 = scmp.ne.s32.totalorder %s26_s26, %s2287_s27  ;;  %p2293_p7 = scmp.lt.s32.totalorder %s2287_s27, %s2287_s27 }
  0x14   :  { %p2294_p8 = por %p2293_p7, %p2292_p6 }
  0x16   :  { %p2295_p9 = pnand %p2294_p8, %p2288_p5 }
  0x18   :  { %2298 = shalt.err (!%p2295_p9)
}
  0x19   :  { %s2330_s28 = smov 256   ;;  %s2331_s29 = smov 16  }
  0x1a   :  { %31 = dma.hbm_to_vmem [thread:$0]  %s3325_s1, 4096, %s26_s26, [#allocation4], %s2330_s28, %s2330_s28, %s2331_s29  }
  0x1b   :  { %s2332_s2 = smov [#allocation9]  }
  0x1c   :  { %s50_s6 = sshll.u32 %s2332_s2, 4  ;;  %s51_s6 = int_to_ptr.vmem [resolvable:$true] %s50_s6 }
  0x1d   :  { %s2307_s0 = scalar_lea.vmem %s51_s6, 256  ;;  %p2312_p11 = scmp.lt.s32.totalorder %s51_s6, %s51_s6 }
  0x1e   :  { %p2308_p10 = scmp.ne.s32.totalorder %s51_s6, %s2307_s0  ;;  %p2313_p12 = scmp.lt.s32.totalorder %s2307_s0, %s2307_s0 }
  0x20   :  { %p2314_p13 = por %p2313_p12, %p2312_p11 }
  0x22   :  { %p2315_p0 = pnand %p2314_p13, %p2308_p10 }
  0x24   :  { %2318 = shalt.err (!%p2315_p0)
}
  0x25   :  { %53 = dma.hbm_to_vmem [thread:$0]  %s3327_s3, 256, %s51_s6, [#allocation8]  }
  0x26   :  { %2319 = dma.done.wait [#allocation5], 32  }
  0x27   :  { %2320 = vsyncadd [#allocation5], 4294967264 }
  0x28   :  { %2321 = dma.done.wait [#allocation4], 4096  }
  0x29   :  { %2322 = vsyncadd [#allocation4], 4294963200 }
  0x2a   :  { %2323 = dma.done.wait [#allocation8], 4864  }
  0x2b   :  { %2324 = vsyncadd [#allocation8], 4294962432 }
  0x2c   :  { %66 = sfence }
  0x2d   :  { %v299_v0 = vld [vmem:[#allocation6 + $0xf8] sm:$0xff]  ;;  %v298_v1 = vld [vmem:[#allocation6 + $0xf0] sm:$0xff]  ;;  %v297_v2 = vld [vmem:[#allocation6 + $0xe8] sm:$0xff]  ;;  %v68_v3 = vlaneseq  ;;  %s2373_s1 = sld [smem:[#allocation3]]  ;;  %v2333_v5 = vmov 0.0  }
  0x2e   :  { %300 = vmatprep.subr.mxu0 %v299_v0  ;;  %v296_v4 = vld [vmem:[#allocation6 + $0xe0] sm:$0xff]  ;;  %364 = vmatprep.mubr.f32.mxu0 %v2333_v5  ;;  %76 = vst [vmem:[#allocation2] sm:$0xff] %v2333_v5  ;;  %77 = vst [vmem:[#allocation2 + $0x8] sm:$0xff] %v2333_v5  ;;  %s1957_s3 = sld [smem:[#allocation3 + $0x8]]  ;;  %v295_v6 = vld [vmem:[#allocation6 + $0xd8] sm:$0xff] }
  0x2f   :  { %78 = vst [vmem:[#allocation2 + $0x10] sm:$0xff] %v2333_v5  ;;  %79 = vst [vmem:[#allocation2 + $0x18] sm:$0xff] %v2333_v5  ;;  %301 = vmatpush1.msra.mxu0 %v298_v1  ;;  %s2384_s9 = sld [smem:[#allocation3 + $0x80]]  ;;  %v294_v7 = vld [vmem:[#allocation6 + $0xd0] sm:$0xff]  ;;  %v2387_v8 = vand.u32 127, %v68_v3  ;;  %v293_v9 = vld [vmem:[#allocation6 + $0xc8] sm:$0xff] }
  0x30   :  { %80 = vst [vmem:[#allocation2 + $0x20] sm:$0xff] %v2333_v5  ;;  %81 = vst [vmem:[#allocation2 + $0x28] sm:$0xff] %v2333_v5  ;;  %302 = vmatprep.subr.mxu0 %v297_v2  ;;  %s2389_s10 = sld [smem:[#allocation3 + $0x88]]  ;;  %v292_v10 = vld [vmem:[#allocation6 + $0xc0] sm:$0xff]  ;;  %v291_v11 = vld [vmem:[#allocation6 + $0xb8] sm:$0xff] }
  0x31   :  { %82 = vst [vmem:[#allocation2 + $0x30] sm:$0xff] %v2333_v5  ;;  %83 = vst [vmem:[#allocation2 + $0x38] sm:$0xff] %v2333_v5  ;;  %303 = vmatpush1.msra.mxu0 %v296_v4  ;;  %s2391_s11 = sld [smem:[#allocation3 + $0x1]]  ;;  %v290_v13 = vld [vmem:[#allocation6 + $0xb0] sm:$0xff]  ;;  %v289_v15 = vld [vmem:[#allocation6 + $0xa8] sm:$0xff] }
  0x32   :  { %304 = vmatprep.subr.mxu0 %v295_v6  ;;  %s2393_s12 = sld [smem:[#allocation3 + $0x9]]  ;;  %v288_v18 = vld [vmem:[#allocation6 + $0xa0] sm:$0xff]  ;;  %v287_v19 = vld [vmem:[#allocation6 + $0x98] sm:$0xff]  ;;  %v286_v21 = vld [vmem:[#allocation6 + $0x90] sm:$0xff] }
  0x33   :  { %305 = vmatpush1.msra.mxu0 %v294_v7  ;;  %v87_v12 = vstv %s2373_s1  ;;  %s2396_s13 = sld [smem:[#allocation3 + $0x81]]  ;;  %v285_v22 = vld [vmem:[#allocation6 + $0x88] sm:$0xff]  ;;  %v284_v25 = vld [vmem:[#allocation6 + $0x80] sm:$0xff]  ;;  %v283_v28 = vld [vmem:[#allocation6 + $0x78] sm:$0xff] }
  0x34   :  { %306 = vmatprep.subr.mxu0 %v293_v9  ;;  %s86_s14 = sadd.s32 100, %s1957_s3  ;;  %vm2399_vm0 = vcmp.eq.s32.totalorder %v2387_v8, %v87_v12  ;;  %s2403_s15 = sld [smem:[#allocation3 + $0x89]]  ;;  %v282_v31 = vld [vmem:[#allocation6 + $0x70] sm:$0xff]  ;;  %v281_v34 = vld [vmem:[#allocation6 + $0x68] sm:$0xff]  ;;  %v280_v37 = vld [vmem:[#allocation6 + $0x60] sm:$0xff] }
  0x35   :  { %307 = vmatpush1.msra.mxu0 %v292_v10  ;;  %v89_v16 = vstv %s86_s14  ;;  %v98_v17 = vstv %s2384_s9  ;;  %s2406_s16 = sld [smem:[#allocation3 + $0x2]]  ;;  %v279_v40 = vld [vmem:[#allocation6 + $0x58] sm:$0xff]  ;;  %v278_v43 = vld [vmem:[#allocation6 + $0x50] sm:$0xff]  ;;  %v277_v46 = vld [vmem:[#allocation6 + $0x48] sm:$0xff] }
  0x36   :  { %308 = vmatprep.subr.mxu0 %v291_v11  ;;  %vm90_vm1 = vcmp.eq.s32.totalorder %v2387_v8, %v89_v16  ;;  %s97_s17 = sadd.s32 100, %s2389_s10  ;;  %vm2411_vm2 = vcmp.eq.s32.totalorder %v2387_v8, %v98_v17  ;;  %s2415_s18 = sld [smem:[#allocation3 + $0xa]]  ;;  %v276_v49 = vld [vmem:[#allocation6 + $0x40] sm:$0xff]  ;;  %v275_v52 = vld [vmem:[#allocation6 + $0x38] sm:$0xff]  ;;  %v274_v55 = vld [vmem:[#allocation6 + $0x30] sm:$0xff] }
  0x37   :  { %309 = vmatpush1.msra.mxu0 %v290_v13  ;;  %vm91_vm3 = vmor %vm2399_vm0, %vm90_vm1  ;;  %v100_v23 = vstv %s97_s17  ;;  %v109_v24 = vstv %s2391_s11  ;;  %s2420_s19 = sld [smem:[#allocation3 + $0x82]]  ;;  %v273_v58 = vld [vmem:[#allocation6 + $0x28] sm:$0xff]  ;;  %v272_v61 = vld [vmem:[#allocation6 + $0x20] sm:$0xff] }
  0x38   :  { %310 = vmatprep.subr.mxu0 %v289_v15  ;;  %v1958_v26 = vsel %vm91_vm3, 1.0, %v2333_v5  ;;  %vm101_vm4 = vcmp.eq.s32.totalorder %v2387_v8, %v100_v23  ;;  %s108_s20 = sadd.s32 100, %s2393_s12  ;;  %vm2426_vm5 = vcmp.eq.s32.totalorder %v2387_v8, %v109_v24  ;;  %s2430_s21 = sld [smem:[#allocation3 + $0x8a]]  ;;  %v271_v2 = vld [vmem:[#allocation6 + $0x18] sm:$0xff]  ;;  %v270_v4 = vld [vmem:[#allocation6 + $0x10] sm:$0xff]  ;;  %v269_v9 = vld [vmem:[#allocation6 + $0x8] sm:$0xff] }
  0x39   :  { %311 = vmatpush1.msra.mxu0 %v288_v18  ;;  %94 = vst [vmem:[#allocation2] sm:$0x1] %v1958_v26  ;;  %vm102_vm6 = vmor %vm2411_vm2, %vm101_vm4  ;;  %v111_v29 = vstv %s108_s20  ;;  %v120_v30 = vstv %s2396_s13  ;;  %s2435_s22 = sld [smem:[#allocation3 + $0x3]]  ;;  %v268_v16 = vld [vmem:[#allocation6] sm:$0xff]  ;;  %v2732_v23 = vld [vmem:[#allocation7 + $0x10] ss:$8 sps:$4 sm:$0xff]  }
  0x3a   :  { %312 = vmatprep.subr.mxu0 %v287_v19  ;;  %v1961_v32 = vsel %vm102_vm6, 1.0, %v2333_v5  ;;  %vm112_vm7 = vcmp.eq.s32.totalorder %v2387_v8, %v111_v29  ;;  %s119_s23 = sadd.s32 100, %s2403_s15  ;;  %vm2441_vm8 = vcmp.eq.s32.totalorder %v2387_v8, %v120_v30  ;;  %s2445_s24 = sld [smem:[#allocation3 + $0xb]]  ;;  %v2717_v19 = vld [vmem:[#allocation7 + $0x24] ss:$8 sps:$4 sm:$0xff]  }
  0x3b   :  { %313 = vmatpush1.msra.mxu0 %v286_v21  ;;  %105 = vst [vmem:[#allocation2 + $0x1] sm:$0x1] %v1961_v32  ;;  %vm113_vm9 = vmor %vm2426_vm5, %vm112_vm7  ;;  %v122_v35 = vstv %s119_s23  ;;  %v131_v36 = vstv %s2406_s16  ;;  %s2450_s25 = sld [smem:[#allocation3 + $0x83]] }
  0x3c   :  { %314 = vmatprep.subr.mxu0 %v285_v22  ;;  %v1964_v38 = vsel %vm113_vm9, 1.0, %v2333_v5  ;;  %vm123_vm10 = vcmp.eq.s32.totalorder %v2387_v8, %v122_v35  ;;  %s130_s26 = sadd.s32 100, %s2415_s18  ;;  %vm2456_vm11 = vcmp.eq.s32.totalorder %v2387_v8, %v131_v36  ;;  %s2460_s27 = sld [smem:[#allocation3 + $0x8b]] }
  0x3d   :  { %315 = vmatpush1.msra.mxu0 %v284_v25  ;;  %116 = vst [vmem:[#allocation2 + $0x8] sm:$0x1] %v1964_v38  ;;  %vm124_vm12 = vmor %vm2441_vm8, %vm123_vm10  ;;  %v133_v41 = vstv %s130_s26  ;;  %v142_v42 = vstv %s2420_s19  ;;  %s2465_s28 = sld [smem:[#allocation3 + $0x4]] }
  0x3e   :  { %316 = vmatprep.subr.mxu0 %v283_v28  ;;  %v1967_v44 = vsel %vm124_vm12, 1.0, %v2333_v5  ;;  %vm134_vm13 = vcmp.eq.s32.totalorder %v2387_v8, %v133_v41  ;;  %s141_s29 = sadd.s32 100, %s2430_s21  ;;  %vm2471_vm14 = vcmp.eq.s32.totalorder %v2387_v8, %v142_v42  ;;  %s2475_s30 = sld [smem:[#allocation3 + $0xc]] }
  0x3f   :  { %317 = vmatpush1.msra.mxu0 %v282_v31  ;;  %127 = vst [vmem:[#allocation2 + $0x9] sm:$0x1] %v1967_v44  ;;  %vm135_vm15 = vmor %vm2456_vm11, %vm134_vm13  ;;  %v144_v47 = vstv %s141_s29  ;;  %v153_v48 = vstv %s2435_s22  ;;  %s2480_s5 = sld [smem:[#allocation3 + $0x84]] }
  0x40   :  { %318 = vmatprep.subr.mxu0 %v281_v34  ;;  %v1970_v50 = vsel %vm135_vm15, 1.0, %v2333_v5  ;;  %vm145_vm0 = vcmp.eq.s32.totalorder %v2387_v8, %v144_v47  ;;  %s152_s2 = sadd.s32 100, %s2445_s24  ;;  %vm2486_vm1 = vcmp.eq.s32.totalorder %v2387_v8, %v153_v48  ;;  %s2490_s6 = sld [smem:[#allocation3 + $0x8c]]  ;;  %v70_v48 = vadd.s32 128, %v2387_v8 }
  0x41   :  { %319 = vmatpush1.msra.mxu0 %v280_v37  ;;  %138 = vst [vmem:[#allocation2 + $0x10] sm:$0x1] %v1970_v50  ;;  %vm146_vm2 = vmor %vm2471_vm14, %vm145_vm0  ;;  %v155_v53 = vstv %s152_s2  ;;  %v164_v54 = vstv %s2450_s25  ;;  %s2495_s0 = sld [smem:[#allocation3 + $0x5]]  ;;  %v71_v50 = vand.u32 63, %v2387_v8  ;;  %s2335_s25 = smov 64  }
  0x42   :  { %320 = vmatprep.subr.mxu0 %v279_v40  ;;  %v1973_v56 = vsel %vm146_vm2, 1.0, %v2333_v5  ;;  %vm156_vm3 = vcmp.eq.s32.totalorder %v2387_v8, %v155_v53  ;;  %s163_s7 = sadd.s32 100, %s2460_s27  ;;  %vm2501_vm4 = vcmp.eq.s32.totalorder %v2387_v8, %v164_v54  ;;  %s2505_s8 = sld [smem:[#allocation3 + $0xd]]  ;;  %v260_v17 = vld [vmem:[#allocation2] sm:$0xff] }
  0x43   :  { %321 = vmatpush1.msra.mxu0 %v278_v43  ;;  %149 = vst [vmem:[#allocation2 + $0x11] sm:$0x1] %v1973_v56  ;;  %vm157_vm5 = vmor %vm2486_vm1, %vm156_vm3  ;;  %v166_v59 = vstv %s163_s7  ;;  %v175_v60 = vstv %s2465_s28  ;;  %s2510_s1 = sld [smem:[#allocation3 + $0x85]] }
  0x44   :  { %322 = vmatprep.subr.mxu0 %v277_v46  ;;  %v1976_v62 = vsel %vm157_vm5, 1.0, %v2333_v5  ;;  %vm167_vm6 = vcmp.eq.s32.totalorder %v2387_v8, %v166_v59  ;;  %s174_s3 = sadd.s32 100, %s2475_s30  ;;  %vm2516_vm7 = vcmp.eq.s32.totalorder %v2387_v8, %v175_v60  ;;  %s2520_s9 = sld [smem:[#allocation3 + $0x8d]] }
  0x45   :  { %323 = vmatpush1.msra.mxu0 %v276_v49  ;;  %160 = vst [vmem:[#allocation2 + $0x18] sm:$0x1] %v1976_v62  ;;  %vm168_vm8 = vmor %vm2501_vm4, %vm167_vm6  ;;  %v177_v0 = vstv %s174_s3  ;;  %v186_v1 = vstv %s2480_s5  ;;  %s2525_s10 = sld [smem:[#allocation3 + $0x6]] }
  0x46   :  { %324 = vmatprep.subr.mxu0 %v275_v52  ;;  %v1979_v6 = vsel %vm168_vm8, 1.0, %v2333_v5  ;;  %vm178_vm9 = vcmp.eq.s32.totalorder %v2387_v8, %v177_v0  ;;  %s185_s11 = sadd.s32 100, %s2490_s6  ;;  %vm2531_vm10 = vcmp.eq.s32.totalorder %v2387_v8, %v186_v1  ;;  %s2535_s12 = sld [smem:[#allocation3 + $0xe]]  ;;  %v261_v27 = vld [vmem:[#allocation2 + $0x8] sm:$0xff] }
  0x47   :  { %325 = vmatpush1.msra.mxu0 %v274_v55  ;;  %171 = vst [vmem:[#allocation2 + $0x19] sm:$0x1] %v1979_v6  ;;  %vm179_vm11 = vmor %vm2516_vm7, %vm178_vm9  ;;  %v188_v10 = vstv %s185_s11  ;;  %v197_v11 = vstv %s2495_s0  ;;  %s2540_s13 = sld [smem:[#allocation3 + $0x86]]  ;;  %v2150_v55 = vld [vmem:[#allocation7 + $0xe0] ss:$8 sps:$4 sm:$0xff]  }
  0x48   :  { %326 = vmatprep.subr.mxu0 %v273_v58  ;;  %v1982_v12 = vsel %vm179_vm11, 1.0, %v2333_v5  ;;  %vm189_vm12 = vcmp.eq.s32.totalorder %v2387_v8, %v188_v10  ;;  %s196_s14 = sadd.s32 100, %s2505_s8  ;;  %vm2546_vm13 = vcmp.eq.s32.totalorder %v2387_v8, %v197_v11  ;;  %s2550_s15 = sld [smem:[#allocation3 + $0x8e]] }
  0x49   :  { %327 = vmatpush1.msra.mxu0 %v272_v61  ;;  %182 = vst [vmem:[#allocation2 + $0x20] sm:$0x1] %v1982_v12  ;;  %vm190_vm14 = vmor %vm2531_vm10, %vm189_vm12  ;;  %v199_v14 = vstv %s196_s14  ;;  %v208_v15 = vstv %s2510_s1  ;;  %s2555_s16 = sld [smem:[#allocation3 + $0x7]] }
  0x4a   :  { %328 = vmatprep.subr.mxu0 %v271_v2  ;;  %v1985_v18 = vsel %vm190_vm14, 1.0, %v2333_v5  ;;  %vm200_vm15 = vcmp.eq.s32.totalorder %v2387_v8, %v199_v14  ;;  %s207_s17 = sadd.s32 100, %s2520_s9  ;;  %vm2561_vm0 = vcmp.eq.s32.totalorder %v2387_v8, %v208_v15  ;;  %s2565_s18 = sld [smem:[#allocation3 + $0xf]]  ;;  %v262_v34 = vld [vmem:[#allocation2 + $0x10] sm:$0xff] }
  0x4b   :  { %329 = vmatpush1.msra.mxu0 %v270_v4  ;;  %193 = vst [vmem:[#allocation2 + $0x21] sm:$0x1] %v1985_v18  ;;  %vm201_vm1 = vmor %vm2546_vm13, %vm200_vm15  ;;  %v210_v20 = vstv %s207_s17  ;;  %v219_v21 = vstv %s2525_s10  ;;  %s2570_s19 = sld [smem:[#allocation3 + $0x87]]  ;;  %v2715_v18 = vld [vmem:[#allocation7 + $0x30] ss:$8 sps:$4 sm:$0xff]  }
  0x4c   :  { %330 = vmatprep.subr.mxu0 %v269_v9  ;;  %v1988_v22 = vsel %vm201_vm1, 1.0, %v2333_v5  ;;  %vm211_vm2 = vcmp.eq.s32.totalorder %v2387_v8, %v210_v20  ;;  %s218_s20 = sadd.s32 100, %s2535_s12  ;;  %vm2576_vm3 = vcmp.eq.s32.totalorder %v2387_v8, %v219_v21  ;;  %s2580_s21 = sld [smem:[#allocation3 + $0x8f]]  ;;  %v2722_v20 = vld [vmem:[#allocation7 + $0x20] ss:$8 sps:$4 sm:$0xff]   ;;  %v2334_v21 = vmov 0  }
  0x4d   :  { %331 = vmatpush1.msra.mxu0 %v268_v16  ;;  %204 = vst [vmem:[#allocation2 + $0x28] sm:$0x1] %v1988_v22  ;;  %vm212_vm4 = vmor %vm2561_vm0, %vm211_vm2  ;;  %v221_v24 = vstv %s218_s20  ;;  %v230_v25 = vstv %s2540_s13  ;;  %vm2629_vm0 = vcmp.lt.s32.totalorder %v71_v50, 32  ;;  %515 = vmatprep.mubr.bf16.mxu1 %v2334_v21  ;;  %v2726_v22 = vld [vmem:[#allocation7 + $0x14] ss:$8 sps:$4 sm:$0xff]   ;;  %vm479_vm2 = vcmask 523264  }
  0x4e   :  { %365 = vmatmul.mubr.f32.vlgmr.msra.gmra.mxu0 %v260_v17  ;;  %v1991_v26 = vsel %vm212_vm4, 1.0, %v2333_v5  ;;  %vm222_vm5 = vcmp.eq.s32.totalorder %v2387_v8, %v221_v24  ;;  %s229_s22 = sadd.s32 100, %s2550_s15  ;;  %vm231_vm6 = vcmp.eq.s32.totalorder %v2387_v8, %v230_v25  ;;  %v263_v38 = vld [vmem:[#allocation2 + $0x18] sm:$0xff]  ;;  %v2735_v24 = vld [vmem:[#allocation7 + $0x4] ss:$8 sps:$4 sm:$0xff]   ;;  %vm1864_vm4 = vcmask 261120  }
  0x4f   :  { %370 = vmatprep.mubr.f32.mxu0 %v2333_v5  ;;  %215 = vst [vmem:[#allocation2 + $0x29] sm:$0x1] %v1991_v26  ;;  %vm223_vm7 = vmor %vm2576_vm3, %vm222_vm5  ;;  %v232_v28 = vstv %s229_s22  ;;  %v241_v29 = vstv %s2555_s16  ;;  %v2713_v17 = vld [vmem:[#allocation7 + $0x34] ss:$8 sps:$4 sm:$0xff]   ;;  %v2741_v26 = vld [vmem:[#allocation7] ss:$8 sps:$4 sm:$0xff]  }
  0x50   :  { %v1994_v30 = vsel %vm223_vm7, 1.0, %v2333_v5  ;;  %vm233_vm8 = vcmp.eq.s32.totalorder %v2387_v8, %v232_v28  ;;  %s240_s23 = sadd.s32 100, %s2565_s18  ;;  %vm242_vm9 = vcmp.eq.s32.totalorder %v2387_v8, %v241_v29  ;;  %491 = vmatprep.subr.bf16.mxu1 %v2713_v17  ;;  %711 = vmatprep.subr.bf16.mxu0 %v2713_v17  ;;  %vm75_vm3 = vcmp.lt.s32.totalorder %v2387_v8, 32 }
  0x51   :  { %226 = vst [vmem:[#allocation2 + $0x30] sm:$0x1] %v1994_v30  ;;  %vm234_vm10 = vmor %vm231_vm6, %vm233_vm8  ;;  %v243_v31 = vstv %s240_s23  ;;  %v252_v32 = vstv %s2570_s19  ;;  %492 = vmatpush1.bf16.msra.mxu1 %v2715_v18  ;;  %712 = vmatpush1.bf16.msra.mxu0 %v2715_v18 }
  0x52   :  { %371 = vmatmul.mubr.f32.gmra.mxu0 %v261_v27  ;;  %v1997_v33 = vsel %vm234_vm10, 1.0, %v2333_v5  ;;  %vm244_vm11 = vcmp.eq.s32.totalorder %v2387_v8, %v243_v31  ;;  %s251_s24 = sadd.s32 100, %s2580_s21  ;;  %vm253_vm12 = vcmp.eq.s32.totalorder %v2387_v8, %v252_v32  ;;  %v264_v39 = vld [vmem:[#allocation2 + $0x20] sm:$0xff]  ;;  %493 = vmatprep.subr.bf16.mxu1 %v2717_v19 }
  0x53   :  { %376 = vmatprep.mubr.f32.mxu0 %v2333_v5  ;;  %237 = vst [vmem:[#allocation2 + $0x31] sm:$0x1] %v1997_v33  ;;  %vm245_vm13 = vmor %vm242_vm9, %vm244_vm11  ;;  %v254_v35 = vstv %s251_s24  ;;  %713 = vmatprep.subr.bf16.mxu0 %v2717_v19 }
  0x54   :  { %v2000_v36 = vsel %vm245_vm13, 1.0, %v2333_v5  ;;  %vm255_vm14 = vcmp.eq.s32.totalorder %v2387_v8, %v254_v35  ;;  %v2154_v8 = vld [vmem:[#allocation7 + $0x100] ss:$8 sps:$4 sm:$0xff]  }
  0x55   :  { %248 = vst [vmem:[#allocation2 + $0x38] sm:$0x1] %v2000_v36  ;;  %vm256_vm15 = vmor %vm253_vm12, %vm255_vm14  ;;  %494 = vmatpush1.bf16.msra.mxu1 %v2722_v20  ;;  %714 = vmatpush1.bf16.msra.mxu0 %v2722_v20 }
  0x56   :  { %377 = vmatmul.mubr.f32.gmra.mxu0 %v262_v34  ;;  %v2003_v37 = vsel %vm256_vm15, 1.0, %v2333_v5  ;;  %v265_v40 = vld [vmem:[#allocation2 + $0x28] sm:$0xff]  ;;  %495 = vmatprep.subr.bf16.mxu1 %v2726_v22 }
  0x57   :  { %382 = vmatprep.mubr.f32.mxu0 %v2333_v5  ;;  %259 = vst [vmem:[#allocation2 + $0x39] sm:$0x1] %v2003_v37  ;;  %715 = vmatprep.subr.bf16.mxu0 %v2726_v22 }
  0x59   :  { %496 = vmatpush1.bf16.msra.mxu1 %v2732_v23  ;;  %716 = vmatpush1.bf16.msra.mxu0 %v2732_v23 }
  0x5a   :  { %383 = vmatmul.mubr.f32.gmra.mxu0 %v263_v38  ;;  %v266_v41 = vld [vmem:[#allocation2 + $0x30] sm:$0xff]  ;;  %497 = vmatprep.subr.bf16.mxu1 %v2735_v24 }
  0x5b   :  { %388 = vmatprep.mubr.f32.mxu0 %v2333_v5  ;;  %717 = vmatprep.subr.bf16.mxu0 %v2735_v24 }
  0x5d   :  { %498 = vmatpush1.bf16.msra.mxu1 %v2741_v26  ;;  %718 = vmatpush1.bf16.msra.mxu0 %v2741_v26 }
  0x5e   :  { %389 = vmatmul.mubr.f32.gmra.mxu0 %v264_v39  ;;  %v267_v42 = vld [vmem:[#allocation2 + $0x38] sm:$0xff]  ;;  %567 = vmatprep.subr.bf16.mxu1 %v2713_v17 }
  0x5f   :  { %394 = vmatprep.mubr.f32.mxu0 %v2333_v5  ;;  %855 = vmatprep.subr.bf16.mxu0 %v2713_v17 }
  0x62   :  { %395 = vmatmul.mubr.f32.gmra.mxu0 %v265_v40 }
  0x63   :  { %400 = vmatprep.mubr.f32.mxu0 %v2333_v5 }
  0x66   :  { %401 = vmatmul.mubr.f32.gmra.mxu0 %v266_v41 }
  0x67   :  { %406 = vmatprep.mubr.f32.mxu0 %v2333_v5  ;;  %v72_v5 = vand.u32 63, %v70_v48 }
  0x69   :  { %vm2635_vm1 = vcmp.lt.s32.totalorder %v72_v5, 32 }
  0x6a   :  { %407 = vmatmul.mubr.f32.gmra.mxu0 %v267_v42 }
  0x6b   :  { %735 = vmatprep.mubr.bf16.mxu0 %v2334_v21 }
 0x10e   :  { %v2611_v43 = vpop.f32.mrf.mxu0 }
 0x110   :  { %v2613_v44 = vpop.f32.mrf.mxu0 }
 0x112   :  { %v2615_v45 = vpop.f32.mrf.mxu0 }
 0x114   :  { %v2617_v46 = vpop.f32.mrf.mxu0 }
 0x116   :  { %v2619_v47 = vpop.f32.mrf.mxu0 }
 0x118   :  { %v2622_v49 = vpop.f32.mrf.mxu0 }
 0x11a   :  { %v2625_v51 = vpop.f32.mrf.mxu0 }
 0x11c   :  { %v2627_v52 = vpop.f32.mrf.mxu0 }
 0x11e   :  { %v2633_v54 = vpop.f32.mrf.mxu0 }
 0x11f   :  { %v625_v56 = vsel %vm2629_vm0, %v2625_v51, %v2633_v54  ;;  %v697_v57 = vsel %vm2629_vm0, %v2633_v54, %v2625_v51 }
 0x120   :  { %v2647_v58 = vpop.f32.mrf.mxu0 }
 0x121   :  { %v626_v59 = vsel %vm2635_vm1, %v2627_v52, %v2647_v58  ;;  %v698_v60 = vsel %vm2635_vm1, %v2647_v58, %v2627_v52 }
 0x122   :  { %v2657_v61 = vpop.f32.mrf.mxu0 }
 0x123   :  { %v553_v62 = vsel %vm2629_vm0, %v2619_v47, %v2657_v61  ;;  %v769_v63 = vsel %vm2629_vm0, %v2657_v61, %v2619_v47 }
 0x124   :  { %v2667_v0 = vpop.f32.mrf.mxu0 }
 0x125   :  { %v554_v1 = vsel %vm2635_vm1, %v2622_v49, %v2667_v0  ;;  %v770_v2 = vsel %vm2635_vm1, %v2667_v0, %v2622_v49 }
 0x126   :  { %v2677_v4 = vpop.f32.mrf.mxu0 }
 0x127   :  { %v436_v6 = vsel %vm2629_vm0, %v2615_v45, %v2677_v4  ;;  %v841_v7 = vsel %vm2629_vm0, %v2677_v4, %v2615_v45 }
 0x128   :  { %v2687_v9 = vpop.f32.mrf.mxu0 }
 0x129   :  { %v437_v10 = vsel %vm2635_vm1, %v2617_v46, %v2687_v9  ;;  %v842_v11 = vsel %vm2635_vm1, %v2687_v9, %v2617_v46 }
 0x12a   :  { %v2697_v12 = vpop.f32.mrf.mxu0 }
 0x12b   :  { %v421_v13 = vsel %vm2629_vm0, %v2611_v43, %v2697_v12  ;;  %v913_v14 = vsel %vm2629_vm0, %v2697_v12, %v2611_v43  ;;  %v2125_v12 = vld [vmem:[#allocation7 + $0x70] ss:$8 sps:$4 sm:$0xff]  }
 0x12c   :  { %v2707_v15 = vpop.f32.mrf.mxu0 }
 0x12d   :  { %v422_v16 = vsel %vm2635_vm1, %v2613_v44, %v2707_v15 }
 0x12e   :  { %2155 = vtanh.f32 %v422_v16 }
 0x12f   :  { %2157 = vtanh.f32 %v421_v13 }
 0x13b   :  { %v2156_v25 = vpop.eup %2155 }
 0x13c   :  { %430 = vrot.lane.b32.xlu0 %v2156_v25, %s2335_s25  ;;  %v2158_v27 = vpop.eup %2157  ;;  %v426_v32 = vmul.f32 0.5, %v2156_v25 }
 0x13d   :  { %v425_v28 = vmul.f32 0.5, %v2158_v27 }
 0x13e   :  { %v428_v33 = vadd.f32 0.5, %v426_v32 }
 0x13f   :  { %v427_v29 = vadd.f32 0.5, %v425_v28 }
 0x1ae   :  { %v431_v30 = vpop.permute.xlu0 %430 }
 0x1af   :  { %v433_v31 = vmul.f32 %v431_v30, %v427_v29 }
 0x1b1   :  { %2159 = vtanh.f32 %v433_v31  ;;  %533 = vrot.lane.b32.xlu1 %v433_v31, %s2335_s25 }
 0x1be   :  { %v2160_v34 = vpop.eup %2159 }
 0x1bf   :  { %v2751_v35 = vmul.f32 %v2160_v34, %v428_v33 }
 0x1c1   :  { %v438_v36 = vpack.c.bf16 %v2751_v35, %v2751_v35 }
 0x1c3   :  { %2012 = vmatmul.mubr.msk.bf16.vlgmr.msra.gmra.mxu1 %vm479_vm2, %v438_v36 }
 0x1c4   :  { %568 = vmatpush1.bf16.msra.mxu1 %v2715_v18  ;;  %591 = vmatprep.mubr.bf16.mxu1 %v2334_v21 }
 0x1c5   :  { %569 = vmatprep.subr.bf16.mxu1 %v2717_v19 }
 0x1c8   :  { %570 = vmatpush1.bf16.msra.mxu1 %v2722_v20 }
 0x1c9   :  { %571 = vmatprep.subr.bf16.mxu1 %v2726_v22 }
 0x1cc   :  { %572 = vmatpush1.bf16.msra.mxu1 %v2732_v23 }
 0x1cd   :  { %573 = vmatprep.subr.bf16.mxu1 %v2735_v24 }
 0x1d0   :  { %574 = vmatpush1.bf16.msra.mxu1 %v2741_v26 }
 0x1d1   :  { %639 = vmatprep.subr.bf16.mxu1 %v2713_v17 }
 0x283   :  { %v517_v37 = vpop.f32.mrf.mxu1 }
 0x284   :  { %v524_v38 = vadd.f32 %v517_v37, %v436_v6  ;;  %v534_v6 = vpop.permute.xlu1 %533 }
 0x285   :  { %v519_v39 = vpop.f32.mrf.mxu1 }
 0x286   :  { %v525_v40 = vadd.f32 %v519_v39, %v437_v10 }
 0x287   :  { %v521_v41 = vpop.f32.mrf.mxu1 }
 0x288   :  { %2161 = vtanh.f32 %v525_v40 }
 0x289   :  { %v522_v42 = vpop.f32.mrf.mxu1  ;;  %2163 = vtanh.f32 %v524_v38 }
 0x295   :  { %v2162_v48 = vpop.eup %2161 }
 0x296   :  { %538 = vrot.lane.b32.xlu0 %v2162_v48, %s2335_s25  ;;  %v2164_v50 = vpop.eup %2163  ;;  %v529_v30 = vmul.f32 0.5, %v2162_v48 }
 0x297   :  { %v528_v5 = vmul.f32 0.5, %v2164_v50 }
 0x298   :  { %v531_v31 = vadd.f32 0.5, %v529_v30 }
 0x299   :  { %v530_v13 = vadd.f32 0.5, %v528_v5 }
 0x29b   :  { %v536_v27 = vmul.f32 %v534_v6, %v530_v13 }
 0x308   :  { %v539_v16 = vpop.permute.xlu0 %538 }
 0x309   :  { %v541_v25 = vmul.f32 %v539_v16, %v530_v13 }
 0x30b   :  { %543 = vrot.lane.b32.xlu1 %v541_v25, %s2335_s25 }
 0x37d   :  { %v544_v28 = vpop.permute.xlu1 %543 }
 0x37e   :  { %v546_v29 = vadd.f32 %v544_v28, %v536_v27 }
 0x380   :  { %2165 = vtanh.f32 %v546_v29 }
 0x38d   :  { %v2166_v10 = vpop.eup %2165 }
 0x38e   :  { %549 = vrot.lane.b32.xlu0 %v2166_v10, %s2335_s25 }
 0x400   :  { %v550_v32 = vpop.permute.xlu0 %549 }
 0x401   :  { %v2778_v33 = vmul.f32 %v550_v32, %v531_v31 }
 0x403   :  { %v555_v34 = vpack.c.bf16 %v2778_v33, %v2778_v33 }
 0x405   :  { %2013 = vmatmul.mubr.msk.bf16.vlgmr.msra.gmra.mxu1 %vm479_vm2, %v555_v34 }
 0x406   :  { %640 = vmatpush1.bf16.msra.mxu1 %v2715_v18  ;;  %663 = vmatprep.mubr.bf16.mxu1 %v2334_v21 }
 0x407   :  { %641 = vmatprep.subr.bf16.mxu1 %v2717_v19 }
 0x40a   :  { %642 = vmatpush1.bf16.msra.mxu1 %v2722_v20 }
 0x40b   :  { %643 = vmatprep.subr.bf16.mxu1 %v2726_v22 }
 0x40e   :  { %644 = vmatpush1.bf16.msra.mxu1 %v2732_v23 }
 0x40f   :  { %645 = vmatprep.subr.bf16.mxu1 %v2735_v24 }
 0x412   :  { %646 = vmatpush1.bf16.msra.mxu1 %v2741_v26 }
 0x413   :  { %783 = vmatprep.subr.bf16.mxu1 %v2713_v17 }
 0x4c5   :  { %v593_v36 = vpop.f32.mrf.mxu1 }
 0x4c6   :  { %v600_v37 = vadd.f32 %v593_v36, %v553_v62 }
 0x4c7   :  { %v595_v38 = vpop.f32.mrf.mxu1 }
 0x4c8   :  { %v601_v39 = vadd.f32 %v595_v38, %v554_v1 }
 0x4c9   :  { %v597_v40 = vpop.f32.mrf.mxu1 }
 0x4ca   :  { %2167 = vtanh.f32 %v601_v39 }
 0x4cb   :  { %v598_v41 = vpop.f32.mrf.mxu1  ;;  %2169 = vtanh.f32 %v600_v37 }
 0x4d7   :  { %v2168_v42 = vpop.eup %2167 }
 0x4d8   :  { %610 = vrot.lane.b32.xlu1 %v2168_v42, %s2335_s25  ;;  %v2170_v48 = vpop.eup %2169  ;;  %v605_v1 = vmul.f32 0.5, %v2168_v42 }
 0x4d9   :  { %v604_v50 = vmul.f32 0.5, %v2170_v48 }
 0x4da   :  { %v607_v28 = vadd.f32 0.5, %v605_v1 }
 0x4db   :  { %v606_v5 = vadd.f32 0.5, %v604_v50 }
 0x4dd   :  { %v608_v62 = vmul.f32 %v606_v5, %v546_v29 }
 0x54a   :  { %v611_v13 = vpop.permute.xlu1 %610 }
 0x54b   :  { %v613_v16 = vmul.f32 %v611_v13, %v606_v5 }
 0x54d   :  { %615 = vrot.lane.b32.xlu0 %v613_v16, %s2335_s25 }
 0x5bf   :  { %v616_v25 = vpop.permute.xlu0 %615 }
 0x5c0   :  { %v618_v6 = vadd.f32 %v616_v25, %v608_v62 }
 0x5c2   :  { %2171 = vtanh.f32 %v618_v6 }
 0x5cf   :  { %v2172_v27 = vpop.eup %2171 }
 0x5d0   :  { %621 = vrot.lane.b32.xlu1 %v2172_v27, %s2335_s25 }
 0x642   :  { %v622_v10 = vpop.permute.xlu1 %621 }
 0x643   :  { %v2805_v30 = vmul.f32 %v622_v10, %v607_v28 }
 0x645   :  { %v627_v31 = vpack.c.bf16 %v2805_v30, %v2805_v30 }
 0x647   :  { %2014 = vmatmul.mubr.msk.bf16.vlgmr.msra.gmra.mxu1 %vm479_vm2, %v627_v31 }
 0x648   :  { %784 = vmatpush1.bf16.msra.mxu1 %v2715_v18  ;;  %807 = vmatprep.mubr.bf16.mxu1 %v2334_v21 }
 0x649   :  { %785 = vmatprep.subr.bf16.mxu1 %v2717_v19 }
 0x64c   :  { %786 = vmatpush1.bf16.msra.mxu1 %v2722_v20 }
 0x64d   :  { %787 = vmatprep.subr.bf16.mxu1 %v2726_v22 }
 0x650   :  { %788 = vmatpush1.bf16.msra.mxu1 %v2732_v23 }
 0x651   :  { %789 = vmatprep.subr.bf16.mxu1 %v2735_v24 }
 0x654   :  { %790 = vmatpush1.bf16.msra.mxu1 %v2741_v26 }
 0x655   :  { %927 = vmatprep.subr.bf16.mxu1 %v2713_v17 }
 0x707   :  { %v665_v29 = vpop.f32.mrf.mxu1 }
 0x708   :  { %v672_v32 = vadd.f32 %v665_v29, %v625_v56 }
 0x709   :  { %v667_v34 = vpop.f32.mrf.mxu1 }
 0x70a   :  { %v673_v36 = vadd.f32 %v667_v34, %v626_v59 }
 0x70b   :  { %v669_v37 = vpop.f32.mrf.mxu1 }
 0x70c   :  { %2173 = vtanh.f32 %v673_v36 }
 0x70d   :  { %v670_v38 = vpop.f32.mrf.mxu1  ;;  %2175 = vtanh.f32 %v672_v32 }
 0x719   :  { %v2174_v39 = vpop.eup %2173 }
 0x71a   :  { %682 = vrot.lane.b32.xlu0 %v2174_v39, %s2335_s25  ;;  %v2176_v17 = vpop.eup %2175  ;;  %v677_v59 = vmul.f32 0.5, %v2174_v39 }
 0x71b   :  { %v676_v40 = vmul.f32 0.5, %v2176_v17 }
 0x71c   :  { %v679_v16 = vadd.f32 0.5, %v677_v59 }
 0x71d   :  { %v678_v41 = vadd.f32 0.5, %v676_v40 }
 0x71f   :  { %v680_v56 = vmul.f32 %v678_v41, %v618_v6 }
 0x78c   :  { %v683_v42 = vpop.permute.xlu0 %682 }
 0x78d   :  { %v685_v48 = vmul.f32 %v683_v42, %v678_v41 }
 0x78f   :  { %687 = vrot.lane.b32.xlu1 %v685_v48, %s2335_s25 }
 0x801   :  { %v688_v50 = vpop.permute.xlu1 %687 }
 0x802   :  { %v690_v5 = vadd.f32 %v688_v50, %v680_v56 }
 0x804   :  { %2177 = vtanh.f32 %v690_v5 }
 0x811   :  { %v2178_v13 = vpop.eup %2177 }
 0x812   :  { %693 = vrot.lane.b32.xlu0 %v2178_v13, %s2335_s25 }
 0x884   :  { %v694_v62 = vpop.permute.xlu0 %693 }
 0x885   :  { %v2832_v25 = vmul.f32 %v694_v62, %v679_v16 }
 0x887   :  { %v699_v27 = vpack.c.bf16 %v2832_v25, %v2832_v25 }
 0x889   :  { %2015 = vmatmul.mubr.msk.bf16.vlgmr.msra.gmra.mxu0 %vm479_vm2, %v699_v27 }
 0x88a   :  { %856 = vmatpush1.bf16.msra.mxu0 %v2715_v18  ;;  %879 = vmatprep.mubr.bf16.mxu0 %v2334_v21 }
 0x88b   :  { %857 = vmatprep.subr.bf16.mxu0 %v2717_v19 }
 0x88e   :  { %858 = vmatpush1.bf16.msra.mxu0 %v2722_v20 }
 0x88f   :  { %859 = vmatprep.subr.bf16.mxu0 %v2726_v22 }
 0x892   :  { %860 = vmatpush1.bf16.msra.mxu0 %v2732_v23 }
 0x893   :  { %861 = vmatprep.subr.bf16.mxu0 %v2735_v24 }
 0x896   :  { %862 = vmatpush1.bf16.msra.mxu0 %v2741_v26 }
 0x949   :  { %v737_v6 = vpop.f32.mrf.mxu0 }
 0x94a   :  { %v744_v1 = vadd.f32 %v737_v6, %v697_v57 }
 0x94b   :  { %v739_v28 = vpop.f32.mrf.mxu0 }
 0x94c   :  { %v745_v10 = vadd.f32 %v739_v28, %v698_v60 }
 0x94d   :  { %v741_v31 = vpop.f32.mrf.mxu0 }
 0x94e   :  { %2179 = vtanh.f32 %v745_v10 }
 0x94f   :  { %v742_v29 = vpop.f32.mrf.mxu0  ;;  %2181 = vtanh.f32 %v744_v1 }
 0x95b   :  { %v2180_v32 = vpop.eup %2179 }
 0x95c   :  { %754 = vrot.lane.b32.xlu1 %v2180_v32, %s2335_s25  ;;  %v2182_v34 = vpop.eup %2181  ;;  %v749_v58 = vmul.f32 0.5, %v2180_v32 }
 0x95d   :  { %v748_v36 = vmul.f32 0.5, %v2182_v34 }
 0x95e   :  { %v751_v60 = vadd.f32 0.5, %v749_v58 }
 0x95f   :  { %v750_v37 = vadd.f32 0.5, %v748_v36 }
 0x961   :  { %v752_v54 = vmul.f32 %v750_v37, %v690_v5 }
 0x9ce   :  { %v755_v38 = vpop.permute.xlu1 %754 }
 0x9cf   :  { %v757_v51 = vmul.f32 %v755_v38, %v750_v37 }
 0x9d1   :  { %759 = vrot.lane.b32.xlu0 %v757_v51, %s2335_s25 }
 0xa43   :  { %v760_v57 = vpop.permute.xlu0 %759 }
 0xa44   :  { %v762_v39 = vadd.f32 %v760_v57, %v752_v54 }
 0xa46   :  { %2183 = vtanh.f32 %v762_v39 }
 0xa53   :  { %v2184_v52 = vpop.eup %2183 }
 0xa54   :  { %765 = vrot.lane.b32.xlu1 %v2184_v52, %s2335_s25 }
 0xac6   :  { %v766_v17 = vpop.permute.xlu1 %765 }
 0xac7   :  { %v768_v40 = vmul.f32 %v766_v17, %v751_v60 }
 0xac9   :  { %v771_v41 = vpack.c.bf16 %v768_v40, %v768_v40  ;;  %v2884_v16 = vsel %vm75_vm3, %v2832_v25, %v768_v40  ;;  %v2889_v62 = vsel %vm75_vm3, %v768_v40, %v2832_v25  ;;  %v914_v40 = vsel %vm2635_vm1, %v2707_v15, %v2613_v44  ;;  %v2128_v44 = vld [vmem:[#allocation7 + $0x60] ss:$8 sps:$4 sm:$0xff]   ;;  %v2133_v15 = vld [vmem:[#allocation7 + $0x54] ss:$8 sps:$4 sm:$0xff]  }
 0xacb   :  { %2016 = vmatmul.mubr.msk.bf16.vlgmr.msra.gmra.mxu1 %vm479_vm2, %v771_v41 }
 0xacc   :  { %928 = vmatpush1.bf16.msra.mxu1 %v2715_v18  ;;  %951 = vmatprep.mubr.bf16.mxu1 %v2334_v21 }
 0xacd   :  { %929 = vmatprep.subr.bf16.mxu1 %v2717_v19 }
 0xad0   :  { %930 = vmatpush1.bf16.msra.mxu1 %v2722_v20 }
 0xad1   :  { %931 = vmatprep.subr.bf16.mxu1 %v2726_v22 }
 0xad4   :  { %932 = vmatpush1.bf16.msra.mxu1 %v2732_v23 }
 0xad5   :  { %933 = vmatprep.subr.bf16.mxu1 %v2735_v24 }
 0xad8   :  { %934 = vmatpush1.bf16.msra.mxu1 %v2741_v26 }
 0xb8b   :  { %v809_v42 = vpop.f32.mrf.mxu1 }
 0xb8c   :  { %v816_v18 = vadd.f32 %v809_v42, %v769_v63 }
 0xb8d   :  { %v811_v48 = vpop.f32.mrf.mxu1 }
 0xb8e   :  { %v817_v19 = vadd.f32 %v811_v48, %v770_v2 }
 0xb8f   :  { %v813_v20 = vpop.f32.mrf.mxu1 }
 0xb90   :  { %2185 = vtanh.f32 %v817_v19 }
 0xb91   :  { %v814_v22 = vpop.f32.mrf.mxu1  ;;  %2187 = vtanh.f32 %v816_v18 }
 0xb9d   :  { %v2186_v23 = vpop.eup %2185 }
 0xb9e   :  { %826 = vrot.lane.b32.xlu0 %v2186_v23, %s2335_s25  ;;  %v2188_v24 = vpop.eup %2187  ;;  %v821_v0 = vmul.f32 0.5, %v2186_v23 }
 0xb9f   :  { %v820_v26 = vmul.f32 0.5, %v2188_v24 }
 0xba0   :  { %v823_v2 = vadd.f32 0.5, %v821_v0 }
 0xba1   :  { %v822_v56 = vadd.f32 0.5, %v820_v26  ;;  %v2130_v26 = vld [vmem:[#allocation7 + $0x64] ss:$8 sps:$4 sm:$0xff]  }
 0xba3   :  { %v824_v61 = vmul.f32 %v822_v56, %v762_v39 }
 0xc10   :  { %v827_v50 = vpop.permute.xlu0 %826 }
 0xc11   :  { %v829_v47 = vmul.f32 %v827_v50, %v822_v56  ;;  %v2131_v56 = vld [vmem:[#allocation7 + $0x50] ss:$8 sps:$4 sm:$0xff]  }
 0xc13   :  { %831 = vrot.lane.b32.xlu1 %v829_v47, %s2335_s25 }
 0xc85   :  { %v832_v63 = vpop.permute.xlu1 %831 }
 0xc86   :  { %v834_v5 = vadd.f32 %v832_v63, %v824_v61  ;;  %v2136_v63 = vld [vmem:[#allocation7 + $0x44] ss:$8 sps:$4 sm:$0xff]  }
 0xc88   :  { %2189 = vtanh.f32 %v834_v5 }
 0xc95   :  { %v2190_v49 = vpop.eup %2189 }
 0xc96   :  { %837 = vrot.lane.b32.xlu0 %v2190_v49, %s2335_s25 }
 0xd08   :  { %v838_v13 = vpop.permute.xlu0 %837 }
 0xd09   :  { %v840_v59 = vmul.f32 %v838_v13, %v823_v2 }
 0xd0b   :  { %v843_v27 = vpack.c.bf16 %v840_v59, %v840_v59  ;;  %v2894_v6 = vsel %vm75_vm3, %v2805_v30, %v840_v59  ;;  %v2899_v1 = vsel %vm75_vm3, %v840_v59, %v2805_v30 }
 0xd0c   :  { %v994_v28 = vpack.c.bf16 %v2884_v16, %v2894_v6  ;;  %v995_v10 = vpack.c.bf16 %v2899_v1, %v2889_v62 }
 0xd0d   :  { %2017 = vmatmul.mubr.msk.bf16.vlgmr.msra.gmra.mxu0 %vm479_vm2, %v843_v27 }
 0xd0e   :  { %1101 = vmatprep.mubr.bf16.mxu0 %v2334_v21 }
 0xdcd   :  { %v881_v25 = vpop.f32.mrf.mxu0 }
 0xdce   :  { %v888_v31 = vadd.f32 %v881_v25, %v841_v7 }
 0xdcf   :  { %v883_v29 = vpop.f32.mrf.mxu0 }
 0xdd0   :  { %v889_v30 = vadd.f32 %v883_v29, %v842_v11 }
 0xdd1   :  { %v885_v32 = vpop.f32.mrf.mxu0 }
 0xdd2   :  { %2191 = vtanh.f32 %v889_v30 }
 0xdd3   :  { %v886_v34 = vpop.f32.mrf.mxu0  ;;  %2193 = vtanh.f32 %v888_v31 }
 0xdd4   :  { %v1005_v34 = vld [vmem:[#allocation9] ss:$8 sm:$0x3] }
 0xddf   :  { %v2192_v36 = vpop.eup %2191 }
 0xde0   :  { %898 = vrot.lane.b32.xlu1 %v2192_v36, %s2335_s25  ;;  %v2194_v37 = vpop.eup %2193  ;;  %v893_v9 = vmul.f32 0.5, %v2192_v36 }
 0xde1   :  { %v892_v38 = vmul.f32 0.5, %v2194_v37 }
 0xde2   :  { %v895_v11 = vadd.f32 0.5, %v893_v9 }
 0xde3   :  { %v894_v51 = vadd.f32 0.5, %v892_v38 }
 0xde5   :  { %v896_v4 = vmul.f32 %v894_v51, %v834_v5  ;;  %v2134_v5 = vld [vmem:[#allocation7 + $0x40] ss:$8 sps:$4 sm:$0xff]  }
 0xe52   :  { %v899_v54 = vpop.permute.xlu1 %898 }
 0xe53   :  { %v901_v45 = vmul.f32 %v899_v54, %v894_v51 }
 0xe55   :  { %903 = vrot.lane.b32.xlu0 %v901_v45, %s2335_s25 }
 0xec7   :  { %v904_v7 = vpop.permute.xlu0 %903 }
 0xec8   :  { %v906_v57 = vadd.f32 %v904_v7, %v896_v4 }
 0xeca   :  { %2195 = vtanh.f32 %v906_v57 }
 0xed7   :  { %v2196_v46 = vpop.eup %2195 }
 0xed8   :  { %909 = vrot.lane.b32.xlu1 %v2196_v46, %s2335_s25 }
 0xf4a   :  { %v910_v39 = vpop.permute.xlu1 %909 }
 0xf4b   :  { %v912_v52 = vmul.f32 %v910_v39, %v895_v11 }
 0xf4d   :  { %v915_v58 = vpack.c.bf16 %v912_v52, %v912_v52  ;;  %v986_v27 = vsel %vm75_vm3, %v2778_v33, %v912_v52  ;;  %v991_v25 = vsel %vm75_vm3, %v912_v52, %v2778_v33 }
 0xf4f   :  { %2018 = vmatmul.mubr.msk.bf16.vlgmr.msra.gmra.mxu1 %vm479_vm2, %v915_v58 }
 0xf50   :  { %1243 = vmatprep.mubr.bf16.mxu1 %v2334_v21 }
0x100f   :  { %v953_v60 = vpop.f32.mrf.mxu1 }
0x1010   :  { %v960_v17 = vadd.f32 %v953_v60, %v913_v14  ;;  %v2127_v14 = vld [vmem:[#allocation7 + $0x74] ss:$8 sps:$4 sm:$0xff]  }
0x1011   :  { %v955_v41 = vpop.f32.mrf.mxu1  ;;  %1077 = vmatprep.subr.bf16.mxu0 %v2127_v14 }
0x1012   :  { %v961_v42 = vadd.f32 %v955_v41, %v914_v40  ;;  %1078 = vmatpush1.bf16.msra.mxu0 %v2125_v12 }
0x1013   :  { %v957_v18 = vpop.f32.mrf.mxu1  ;;  %1079 = vmatprep.subr.bf16.mxu0 %v2130_v26 }
0x1014   :  { %2197 = vtanh.f32 %v961_v42 }
0x1015   :  { %v958_v48 = vpop.f32.mrf.mxu1  ;;  %2199 = vtanh.f32 %v960_v17 }
0x1016   :  { %1080 = vmatpush1.bf16.msra.mxu0 %v2128_v44 }
0x1017   :  { %1081 = vmatprep.subr.bf16.mxu0 %v2133_v15 }
0x101a   :  { %1082 = vmatpush1.bf16.msra.mxu0 %v2131_v56 }
0x101b   :  { %1083 = vmatprep.subr.bf16.mxu0 %v2136_v63 }
0x101e   :  { %1084 = vmatpush1.bf16.msra.mxu0 %v2134_v5 }
0x1021   :  { %v2198_v19 = vpop.eup %2197 }
0x1022   :  { %970 = vrot.lane.b32.xlu0 %v2198_v19, %s2335_s25  ;;  %v2200_v20 = vpop.eup %2199  ;;  %v965_v0 = vmul.f32 0.5, %v2198_v19 }
0x1023   :  { %v964_v22 = vmul.f32 0.5, %v2200_v20 }
0x1024   :  { %v967_v2 = vadd.f32 0.5, %v965_v0 }
0x1025   :  { %v966_v23 = vadd.f32 0.5, %v964_v22 }
0x1027   :  { %v968_v50 = vmul.f32 %v966_v23, %v906_v57 }
0x1094   :  { %v971_v24 = vpop.permute.xlu0 %970 }
0x1095   :  { %v973_v43 = vmul.f32 %v971_v24, %v966_v23 }
0x1097   :  { %975 = vrot.lane.b32.xlu1 %v973_v43, %s2335_s25 }
0x1109   :  { %v976_v47 = vpop.permute.xlu1 %975 }
0x110a   :  { %v978_v61 = vadd.f32 %v976_v47, %v968_v50 }
0x110c   :  { %2201 = vtanh.f32 %v978_v61 }
0x1119   :  { %v2202_v49 = vpop.eup %2201 }
0x111a   :  { %981 = vrot.lane.b32.xlu0 %v2202_v49, %s2335_s25 }
0x118c   :  { %v982_v13 = vpop.permute.xlu0 %981 }
0x118d   :  { %v984_v59 = vmul.f32 %v982_v13, %v967_v2 }
0x118f   :  { %v985_v31 = vsel %vm75_vm3, %v2751_v35, %v984_v59  ;;  %v992_v29 = vsel %vm75_vm3, %v984_v59, %v2751_v35  ;;  %v1008_v35 = vshrl.u32 %v68_v3, 7 }
0x1190   :  { %v993_v30 = vpack.c.bf16 %v986_v27, %v985_v31  ;;  %v996_v32 = vpack.c.bf16 %v992_v29, %v991_v25  ;;  %v3057_v27 = vld [vmem:[#allocation7 + $0xb4] ss:$8 sps:$4 sm:$0xff]   ;;  %v3059_v25 = vld [vmem:[#allocation7 + $0xb0] ss:$8 sps:$4 sm:$0xff]   ;;  %v3061_v31 = vld [vmem:[#allocation7 + $0xa4] ss:$8 sps:$4 sm:$0xff]  }
0x1191   :  { %v1009_v33 = vsub.s32 0, %v1008_v35  ;;  %v1013_v6 = vsub.s32 1, %v1008_v35  ;;  %1219 = vmatprep.subr.bf16.mxu1 %v3057_v27  ;;  %1367 = vmatprep.subr.bf16.mxu0 %v3057_v27  ;;  %v3066_v29 = vld [vmem:[#allocation7 + $0xa0] ss:$8 sps:$4 sm:$0xff]   ;;  %v3078_v35 = vld [vmem:[#allocation7 + $0x84] ss:$8 sps:$4 sm:$0xff]  }
0x1192   :  { %2027 = vmatmul.mubr.msk.bf16.vlgmr.msra.gmra.mxu0 %vm479_vm2, %v993_v30  ;;  %1220 = vmatpush1.bf16.msra.mxu1 %v3059_v25  ;;  %v3070_v30 = vld [vmem:[#allocation7 + $0x94] ss:$8 sps:$4 sm:$0xff]  }
0x1193   :  { %1111 = vmatprep.mubr.bf16.mxu0 %v2334_v21  ;;  %v1010_v36 = vrot.slane %v1005_v34, %v1009_v33  ;;  %v1014_v38 = vrot.slane %v1005_v34, %v1013_v6  ;;  %1368 = vmatpush1.bf16.msra.mxu0 %v3059_v25  ;;  %v3083_v34 = vld [vmem:[#allocation7 + $0x80] ss:$8 sps:$4 sm:$0xff]  }
0x1194   :  { %1221 = vmatprep.subr.bf16.mxu1 %v3061_v31  ;;  %1369 = vmatprep.subr.bf16.mxu0 %v3061_v31 }
0x1196   :  { %1222 = vmatpush1.bf16.msra.mxu1 %v3066_v29 }
0x1197   :  { %1370 = vmatpush1.bf16.msra.mxu0 %v3066_v29  ;;  %1223 = vmatprep.subr.bf16.mxu1 %v3070_v30 }
0x1198   :  { %1371 = vmatprep.subr.bf16.mxu0 %v3070_v30 }
0x119a   :  { %2028 = vmatmul.mubr.msk.bf16.gmra.mxu0 %vm479_vm2, %v994_v28 }
0x119b   :  { %1121 = vmatprep.mubr.bf16.mxu0 %v2334_v21 }
0x11a2   :  { %2029 = vmatmul.mubr.msk.bf16.gmra.mxu0 %vm479_vm2, %v995_v10 }
0x11a3   :  { %1131 = vmatprep.mubr.bf16.mxu0 %v2334_v21 }
0x11aa   :  { %2030 = vmatmul.mubr.msk.bf16.gmra.mxu0 %vm479_vm2, %v996_v32  ;;  %v3074_v32 = vld [vmem:[#allocation7 + $0x90] ss:$8 sps:$4 sm:$0xff]  }
0x11ab   :  { %1391 = vmatprep.mubr.bf16.mxu0 %v2334_v21  ;;  %1224 = vmatpush1.bf16.msra.mxu1 %v3074_v32 }
0x11ac   :  { %1225 = vmatprep.subr.bf16.mxu1 %v3078_v35  ;;  %1372 = vmatpush1.bf16.msra.mxu0 %v3074_v32 }
0x11ad   :  { %1373 = vmatprep.subr.bf16.mxu0 %v3078_v35 }
0x11af   :  { %1226 = vmatpush1.bf16.msra.mxu1 %v3083_v34 }
0x11b0   :  { %1295 = vmatprep.subr.bf16.mxu1 %v3057_v27  ;;  %1374 = vmatpush1.bf16.msra.mxu0 %v3083_v34 }
0x11b1   :  { %1511 = vmatprep.subr.bf16.mxu0 %v3057_v27 }
0x1252   :  { %v1103_v16 = vpop.f32.mrf.mxu0 }
0x1253   :  { %v3025_v56 = vadd.f32 %v1103_v16, %v1010_v36 }
0x1254   :  { %v1105_v28 = vpop.f32.mrf.mxu0 }
0x1255   :  { %v3037_v5 = vadd.f32 %v1105_v28, %v1014_v38 }
0x1256   :  { %v1107_v37 = vpop.f32.mrf.mxu0 }
0x1257   :  { %v2961_v51 = vadd.f32 %v1107_v37, %v1010_v36 }
0x1258   :  { %v1109_v62 = vpop.f32.mrf.mxu0 }
0x1259   :  { %v2963_v1 = vadd.f32 %v1109_v62, %v1014_v38 }
0x125a   :  { %v1113_v10 = vpop.f32.mrf.mxu0 }
0x125b   :  { %v2965_v54 = vadd.f32 %v1113_v10, %v1010_v36 }
0x125c   :  { %v1115_v45 = vpop.f32.mrf.mxu0 }
0x125d   :  { %v2967_v4 = vadd.f32 %v1115_v45, %v1014_v38 }
0x125e   :  { %v1117_v3 = vpop.f32.mrf.mxu0 }
0x125f   :  { %v2969_v7 = vadd.f32 %v1117_v3, %v1010_v36 }
0x1260   :  { %v1119_v57 = vpop.f32.mrf.mxu0 }
0x1261   :  { %v2971_v46 = vadd.f32 %v1119_v57, %v1014_v38 }
0x1262   :  { %v1123_v9 = vpop.f32.mrf.mxu0 }
0x1263   :  { %v2973_v11 = vadd.f32 %v1123_v9, %v1010_v36 }
0x1264   :  { %v1125_v39 = vpop.f32.mrf.mxu0 }
0x1265   :  { %v2975_v52 = vadd.f32 %v1125_v39, %v1014_v38  ;;  %v1353_v58 = vsel %vm2629_vm0, %v2969_v7, %v2973_v11  ;;  %v1425_v60 = vsel %vm2629_vm0, %v2973_v11, %v2969_v7 }
0x1266   :  { %v1127_v17 = vpop.f32.mrf.mxu0 }
0x1267   :  { %v2985_v40 = vadd.f32 %v1127_v17, %v1010_v36  ;;  %v1354_v41 = vsel %vm2635_vm1, %v2971_v46, %v2975_v52  ;;  %v1426_v42 = vsel %vm2635_vm1, %v2975_v52, %v2971_v46 }
0x1268   :  { %v1129_v18 = vpop.f32.mrf.mxu0 }
0x1269   :  { %v2995_v48 = vadd.f32 %v1129_v18, %v1014_v38  ;;  %v1281_v19 = vsel %vm2629_vm0, %v2965_v54, %v2985_v40  ;;  %v1497_v20 = vsel %vm2629_vm0, %v2985_v40, %v2965_v54 }
0x126a   :  { %v1133_v22 = vpop.f32.mrf.mxu0 }
0x126b   :  { %v3005_v23 = vadd.f32 %v1133_v22, %v1010_v36  ;;  %v1282_v24 = vsel %vm2635_vm1, %v2967_v4, %v2995_v48  ;;  %v1498_v43 = vsel %vm2635_vm1, %v2995_v48, %v2967_v4 }
0x126c   :  { %v1135_v12 = vpop.f32.mrf.mxu0 }
0x126d   :  { %v3015_v14 = vadd.f32 %v1135_v12, %v1014_v38  ;;  %v1165_v26 = vsel %vm2629_vm0, %v2961_v51, %v3005_v23  ;;  %v1569_v44 = vsel %vm2629_vm0, %v3005_v23, %v2961_v51 }
0x126e   :  { %v1137_v15 = vpop.f32.mrf.mxu0 }
0x126f   :  { %v3027_v50 = vadd.f32 %v1137_v15, %v1010_v36  ;;  %v1166_v47 = vsel %vm2635_vm1, %v2963_v1, %v3015_v14  ;;  %v1570_v61 = vsel %vm2635_vm1, %v3015_v14, %v2963_v1 }
0x1270   :  { %v1139_v63 = vpop.f32.mrf.mxu0 }
0x1271   :  { %v1150_v49 = vsel %vm2629_vm0, %v3025_v56, %v3027_v50  ;;  %v3043_v0 = vadd.f32 %v1139_v63, %v1014_v38  ;;  %v1641_v2 = vsel %vm2629_vm0, %v3027_v50, %v3025_v56  ;;  %v2149_v50 = vld [vmem:[#allocation7 + $0xf0] ss:$8 sps:$4 sm:$0xff]  }
0x1273   :  { %v1151_v13 = vsel %vm2635_vm1, %v3037_v5, %v3043_v0  ;;  %v1642_v59 = vsel %vm2635_vm1, %v3043_v0, %v3037_v5  ;;  %v2151_v5 = vld [vmem:[#allocation7 + $0xd0] ss:$8 sps:$4 sm:$0xff]  }
0x1274   :  { %2203 = vtanh.f32 %v1151_v13 }
0x1275   :  { %2205 = vtanh.f32 %v1150_v49 }
0x1281   :  { %v2204_v33 = vpop.eup %2203 }
0x1282   :  { %1159 = vrot.lane.b32.xlu1 %v2204_v33, %s2335_s25  ;;  %v2206_v16 = vpop.eup %2205  ;;  %v1155_v38 = vmul.f32 0.5, %v2204_v33 }
0x1283   :  { %v1154_v6 = vmul.f32 0.5, %v2206_v16 }
0x1284   :  { %v1157_v62 = vadd.f32 0.5, %v1155_v38 }
0x1285   :  { %v1156_v28 = vadd.f32 0.5, %v1154_v6 }
0x12f4   :  { %v1160_v36 = vpop.permute.xlu1 %1159 }
0x12f5   :  { %v1162_v37 = vmul.f32 %v1160_v36, %v1156_v28 }
0x12f7   :  { %2207 = vtanh.f32 %v1162_v37  ;;  %1261 = vrot.lane.b32.xlu1 %v1162_v37, %s2335_s25 }
0x1304   :  { %v2208_v10 = vpop.eup %2207 }
0x1305   :  { %v3093_v45 = vmul.f32 %v2208_v10, %v1157_v62 }
0x1307   :  { %v1167_v3 = vpack.c.bf16 %v3093_v45, %v3093_v45 }
0x1309   :  { %2039 = vmatmul.mubr.msk.bf16.vlgmr.msra.gmra.mxu1 %vm479_vm2, %v1167_v3 }
0x130a   :  { %1296 = vmatpush1.bf16.msra.mxu1 %v3059_v25  ;;  %1319 = vmatprep.mubr.bf16.mxu1 %v2334_v21 }
0x130b   :  { %1297 = vmatprep.subr.bf16.mxu1 %v3061_v31 }
0x130e   :  { %1298 = vmatpush1.bf16.msra.mxu1 %v3066_v29 }
0x130f   :  { %1299 = vmatprep.subr.bf16.mxu1 %v3070_v30 }
0x1312   :  { %1300 = vmatpush1.bf16.msra.mxu1 %v3074_v32 }
0x1313   :  { %1301 = vmatprep.subr.bf16.mxu1 %v3078_v35 }
0x1316   :  { %1302 = vmatpush1.bf16.msra.mxu1 %v3083_v34 }
0x1317   :  { %1439 = vmatprep.subr.bf16.mxu1 %v3057_v27 }
0x13c9   :  { %v1245_v57 = vpop.f32.mrf.mxu1 }
0x13ca   :  { %v1252_v9 = vadd.f32 %v1245_v57, %v1165_v26  ;;  %v1262_v26 = vpop.permute.xlu1 %1261 }
0x13cb   :  { %v1247_v39 = vpop.f32.mrf.mxu1 }
0x13cc   :  { %v1253_v17 = vadd.f32 %v1247_v39, %v1166_v47 }
0x13cd   :  { %v1249_v18 = vpop.f32.mrf.mxu1 }
0x13ce   :  { %2209 = vtanh.f32 %v1253_v17 }
0x13cf   :  { %v1250_v22 = vpop.f32.mrf.mxu1  ;;  %2211 = vtanh.f32 %v1252_v9 }
0x13db   :  { %v2210_v12 = vpop.eup %2209 }
0x13dc   :  { %1266 = vrot.lane.b32.xlu0 %v2210_v12, %s2335_s25  ;;  %v2212_v15 = vpop.eup %2211  ;;  %v1257_v36 = vmul.f32 0.5, %v2210_v12 }
0x13dd   :  { %v1256_v63 = vmul.f32 0.5, %v2212_v15 }
0x13de   :  { %v1259_v37 = vadd.f32 0.5, %v1257_v36 }
0x13df   :  { %v1258_v49 = vadd.f32 0.5, %v1256_v63 }
0x13e1   :  { %v1264_v16 = vmul.f32 %v1262_v26, %v1258_v49 }
0x144e   :  { %v1267_v13 = vpop.permute.xlu0 %1266 }
0x144f   :  { %v1269_v33 = vmul.f32 %v1267_v13, %v1258_v49 }
0x1451   :  { %1271 = vrot.lane.b32.xlu0 %v1269_v33, %s2335_s25 }
0x14c3   :  { %v1272_v6 = vpop.permute.xlu0 %1271 }
0x14c4   :  { %v1274_v28 = vadd.f32 %v1272_v6, %v1264_v16 }
0x14c6   :  { %2213 = vtanh.f32 %v1274_v28 }
0x14d3   :  { %v2214_v47 = vpop.eup %2213 }
0x14d4   :  { %1277 = vrot.lane.b32.xlu1 %v2214_v47, %s2335_s25 }
0x1546   :  { %v1278_v38 = vpop.permute.xlu1 %1277 }
0x1547   :  { %v3120_v62 = vmul.f32 %v1278_v38, %v1259_v37 }
0x1549   :  { %v1283_v10 = vpack.c.bf16 %v3120_v62, %v3120_v62 }
0x154b   :  { %2040 = vmatmul.mubr.msk.bf16.vlgmr.msra.gmra.mxu1 %vm479_vm2, %v1283_v10 }
0x154c   :  { %1440 = vmatpush1.bf16.msra.mxu1 %v3059_v25  ;;  %1463 = vmatprep.mubr.bf16.mxu1 %v2334_v21 }
0x154d   :  { %1441 = vmatprep.subr.bf16.mxu1 %v3061_v31 }
0x1550   :  { %1442 = vmatpush1.bf16.msra.mxu1 %v3066_v29 }
0x1551   :  { %1443 = vmatprep.subr.bf16.mxu1 %v3070_v30 }
0x1554   :  { %1444 = vmatpush1.bf16.msra.mxu1 %v3074_v32 }
0x1555   :  { %1445 = vmatprep.subr.bf16.mxu1 %v3078_v35 }
0x1558   :  { %1446 = vmatpush1.bf16.msra.mxu1 %v3083_v34 }
0x1559   :  { %1583 = vmatprep.subr.bf16.mxu1 %v3057_v27 }
0x160b   :  { %v1321_v3 = vpop.f32.mrf.mxu1 }
0x160c   :  { %v1328_v57 = vadd.f32 %v1321_v3, %v1281_v19 }
0x160d   :  { %v1323_v9 = vpop.f32.mrf.mxu1 }
0x160e   :  { %v1329_v39 = vadd.f32 %v1323_v9, %v1282_v24 }
0x160f   :  { %v1325_v17 = vpop.f32.mrf.mxu1 }
0x1610   :  { %2215 = vtanh.f32 %v1329_v39 }
0x1611   :  { %v1326_v18 = vpop.f32.mrf.mxu1  ;;  %2217 = vtanh.f32 %v1328_v57 }
0x161d   :  { %v2216_v22 = vpop.eup %2215 }
0x161e   :  { %1338 = vrot.lane.b32.xlu0 %v2216_v22, %s2335_s25  ;;  %v2218_v12 = vpop.eup %2217  ;;  %v1333_v24 = vmul.f32 0.5, %v2216_v22 }
0x161f   :  { %v1332_v15 = vmul.f32 0.5, %v2218_v12 }
0x1620   :  { %v1335_v6 = vadd.f32 0.5, %v1333_v24 }
0x1621   :  { %v1334_v63 = vadd.f32 0.5, %v1332_v15 }
0x1623   :  { %v1336_v19 = vmul.f32 %v1334_v63, %v1274_v28 }
0x1690   :  { %v1339_v49 = vpop.permute.xlu0 %1338 }
0x1691   :  { %v1341_v13 = vmul.f32 %v1339_v49, %v1334_v63 }
0x1693   :  { %1343 = vrot.lane.b32.xlu1 %v1341_v13, %s2335_s25 }
0x1705   :  { %v1344_v33 = vpop.permute.xlu1 %1343 }
0x1706   :  { %v1346_v26 = vadd.f32 %v1344_v33, %v1336_v19 }
0x1708   :  { %2219 = vtanh.f32 %v1346_v26 }
0x1715   :  { %v2220_v16 = vpop.eup %2219 }
0x1716   :  { %1349 = vrot.lane.b32.xlu0 %v2220_v16, %s2335_s25 }
0x1788   :  { %v1350_v47 = vpop.permute.xlu0 %1349 }
0x1789   :  { %v3147_v36 = vmul.f32 %v1350_v47, %v1335_v6 }
0x178b   :  { %v1355_v37 = vpack.c.bf16 %v3147_v36, %v3147_v36 }
0x178d   :  { %2041 = vmatmul.mubr.msk.bf16.vlgmr.msra.gmra.mxu0 %vm479_vm2, %v1355_v37 }
0x178e   :  { %1512 = vmatpush1.bf16.msra.mxu0 %v3059_v25  ;;  %1535 = vmatprep.mubr.bf16.mxu0 %v2334_v21 }
0x178f   :  { %1513 = vmatprep.subr.bf16.mxu0 %v3061_v31 }
0x1792   :  { %1514 = vmatpush1.bf16.msra.mxu0 %v3066_v29 }
0x1793   :  { %1515 = vmatprep.subr.bf16.mxu0 %v3070_v30 }
0x1796   :  { %1516 = vmatpush1.bf16.msra.mxu0 %v3074_v32 }
0x1797   :  { %1517 = vmatprep.subr.bf16.mxu0 %v3078_v35 }
0x179a   :  { %1518 = vmatpush1.bf16.msra.mxu0 %v3083_v34 }
0x179b   :  { %1655 = vmatprep.subr.bf16.mxu0 %v3057_v27 }
0x184d   :  { %v1393_v28 = vpop.f32.mrf.mxu0 }
0x184e   :  { %v1400_v38 = vadd.f32 %v1393_v28, %v1353_v58 }
0x184f   :  { %v1395_v10 = vpop.f32.mrf.mxu0 }
0x1850   :  { %v1401_v3 = vadd.f32 %v1395_v10, %v1354_v41 }
0x1851   :  { %v1397_v57 = vpop.f32.mrf.mxu0 }
0x1852   :  { %2221 = vtanh.f32 %v1401_v3 }
0x1853   :  { %v1398_v9 = vpop.f32.mrf.mxu0  ;;  %2223 = vtanh.f32 %v1400_v38 }
0x185f   :  { %v2222_v39 = vpop.eup %2221 }
0x1860   :  { %1410 = vrot.lane.b32.xlu1 %v2222_v39, %s2335_s25  ;;  %v2224_v27 = vpop.eup %2223  ;;  %v1405_v41 = vmul.f32 0.5, %v2222_v39 }
0x1861   :  { %v1404_v17 = vmul.f32 0.5, %v2224_v27 }
0x1862   :  { %v1407_v13 = vadd.f32 0.5, %v1405_v41 }
0x1863   :  { %v1406_v18 = vadd.f32 0.5, %v1404_v17 }
0x1865   :  { %v1408_v58 = vmul.f32 %v1406_v18, %v1346_v26 }
0x18d2   :  { %v1411_v22 = vpop.permute.xlu1 %1410 }
0x18d3   :  { %v1413_v12 = vmul.f32 %v1411_v22, %v1406_v18 }
0x18d5   :  { %1415 = vrot.lane.b32.xlu0 %v1413_v12, %s2335_s25 }
0x1947   :  { %v1416_v15 = vpop.permute.xlu0 %1415 }
0x1948   :  { %v1418_v63 = vadd.f32 %v1416_v15, %v1408_v58 }
0x194a   :  { %2225 = vtanh.f32 %v1418_v63 }
0x1957   :  { %v2226_v49 = vpop.eup %2225 }
0x1958   :  { %1421 = vrot.lane.b32.xlu1 %v2226_v49, %s2335_s25 }
0x19ca   :  { %v1422_v19 = vpop.permute.xlu1 %1421 }
0x19cb   :  { %v3174_v33 = vmul.f32 %v1422_v19, %v1407_v13 }
0x19cd   :  { %v1427_v16 = vpack.c.bf16 %v3174_v33, %v3174_v33 }
0x19cf   :  { %2042 = vmatmul.mubr.msk.bf16.vlgmr.msra.gmra.mxu1 %vm479_vm2, %v1427_v16 }
0x19d0   :  { %1584 = vmatpush1.bf16.msra.mxu1 %v3059_v25  ;;  %1607 = vmatprep.mubr.bf16.mxu1 %v2334_v21 }
0x19d1   :  { %1585 = vmatprep.subr.bf16.mxu1 %v3061_v31 }
0x19d4   :  { %1586 = vmatpush1.bf16.msra.mxu1 %v3066_v29 }
0x19d5   :  { %1587 = vmatprep.subr.bf16.mxu1 %v3070_v30 }
0x19d8   :  { %1588 = vmatpush1.bf16.msra.mxu1 %v3074_v32 }
0x19d9   :  { %1589 = vmatprep.subr.bf16.mxu1 %v3078_v35 }
0x19dc   :  { %1590 = vmatpush1.bf16.msra.mxu1 %v3083_v34 }
0x19dd   :  { %2074 = vmatprep.subr.bf16.mxu1 %v2149_v50 }
0x1a8f   :  { %v1465_v26 = vpop.f32.mrf.mxu1 }
0x1a90   :  { %v1472_v24 = vadd.f32 %v1465_v26, %v1425_v60 }
0x1a91   :  { %v1467_v6 = vpop.f32.mrf.mxu1 }
0x1a92   :  { %v1473_v47 = vadd.f32 %v1467_v6, %v1426_v42 }
0x1a93   :  { %v1469_v37 = vpop.f32.mrf.mxu1 }
0x1a94   :  { %2227 = vtanh.f32 %v1473_v47 }
0x1a95   :  { %v1470_v28 = vpop.f32.mrf.mxu1  ;;  %2229 = vtanh.f32 %v1472_v24 }
0x1aa1   :  { %v2228_v38 = vpop.eup %2227 }
0x1aa2   :  { %1482 = vrot.lane.b32.xlu0 %v2228_v38, %s2335_s25  ;;  %v2230_v10 = vpop.eup %2229  ;;  %v1477_v52 = vmul.f32 0.5, %v2228_v38 }
0x1aa3   :  { %v1476_v3 = vmul.f32 0.5, %v2230_v10 }
0x1aa4   :  { %v1479_v42 = vadd.f32 0.5, %v1477_v52 }
0x1aa5   :  { %v1478_v57 = vadd.f32 0.5, %v1476_v3 }
0x1aa7   :  { %v1480_v11 = vmul.f32 %v1478_v57, %v1418_v63 }
0x1b14   :  { %v1483_v9 = vpop.permute.xlu0 %1482 }
0x1b15   :  { %v1485_v7 = vmul.f32 %v1483_v9, %v1478_v57 }
0x1b17   :  { %1487 = vrot.lane.b32.xlu1 %v1485_v7, %s2335_s25 }
0x1b89   :  { %v1488_v60 = vpop.permute.xlu1 %1487 }
0x1b8a   :  { %v1490_v39 = vadd.f32 %v1488_v60, %v1480_v11 }
0x1b8c   :  { %2231 = vtanh.f32 %v1490_v39 }
0x1b99   :  { %v2232_v46 = vpop.eup %2231 }
0x1b9a   :  { %1493 = vrot.lane.b32.xlu0 %v2232_v46, %s2335_s25 }
0x1c0c   :  { %v1494_v27 = vpop.permute.xlu0 %1493 }
0x1c0d   :  { %v1496_v17 = vmul.f32 %v1494_v27, %v1479_v42 }
0x1c0f   :  { %v1499_v18 = vpack.c.bf16 %v1496_v17, %v1496_v17  ;;  %v3225_v41 = vsel %vm75_vm3, %v3174_v33, %v1496_v17  ;;  %v3230_v13 = vsel %vm75_vm3, %v1496_v17, %v3174_v33 }
0x1c11   :  { %2043 = vmatmul.mubr.msk.bf16.vlgmr.msra.gmra.mxu0 %vm479_vm2, %v1499_v18 }
0x1c12   :  { %1656 = vmatpush1.bf16.msra.mxu0 %v3059_v25  ;;  %1679 = vmatprep.mubr.bf16.mxu0 %v2334_v21 }
0x1c13   :  { %1657 = vmatprep.subr.bf16.mxu0 %v3061_v31 }
0x1c16   :  { %1658 = vmatpush1.bf16.msra.mxu0 %v3066_v29 }
0x1c17   :  { %1659 = vmatprep.subr.bf16.mxu0 %v3070_v30 }
0x1c1a   :  { %1660 = vmatpush1.bf16.msra.mxu0 %v3074_v32 }
0x1c1b   :  { %1661 = vmatprep.subr.bf16.mxu0 %v3078_v35 }
0x1c1e   :  { %1662 = vmatpush1.bf16.msra.mxu0 %v3083_v34 }
0x1cd1   :  { %v1537_v22 = vpop.f32.mrf.mxu0 }
0x1cd2   :  { %v1544_v25 = vadd.f32 %v1537_v22, %v1497_v20 }
0x1cd3   :  { %v1539_v21 = vpop.f32.mrf.mxu0 }
0x1cd4   :  { %v1545_v31 = vadd.f32 %v1539_v21, %v1498_v43 }
0x1cd5   :  { %v1541_v29 = vpop.f32.mrf.mxu0 }
0x1cd6   :  { %2233 = vtanh.f32 %v1545_v31 }
0x1cd7   :  { %v1542_v30 = vpop.f32.mrf.mxu0  ;;  %2235 = vtanh.f32 %v1544_v25 }
0x1cd8   :  { %v2152_v30 = vld [vmem:[#allocation7 + $0xc0] ss:$8 sps:$4 sm:$0xff]  }
0x1ce3   :  { %v2234_v32 = vpop.eup %2233 }
0x1ce4   :  { %1554 = vrot.lane.b32.xlu1 %v2234_v32, %s2335_s25  ;;  %v2236_v35 = vpop.eup %2235  ;;  %v1549_v48 = vmul.f32 0.5, %v2234_v32 }
0x1ce5   :  { %v1548_v34 = vmul.f32 0.5, %v2236_v35 }
0x1ce6   :  { %v1551_v43 = vadd.f32 0.5, %v1549_v48 }
0x1ce7   :  { %v1550_v12 = vadd.f32 0.5, %v1548_v34 }
0x1ce9   :  { %v1552_v40 = vmul.f32 %v1550_v12, %v1490_v39 }
0x1d56   :  { %v1555_v58 = vpop.permute.xlu1 %1554 }
0x1d57   :  { %v1557_v54 = vmul.f32 %v1555_v58, %v1550_v12 }
0x1d59   :  { %1559 = vrot.lane.b32.xlu0 %v1557_v54, %s2335_s25 }
0x1dcb   :  { %v1560_v20 = vpop.permute.xlu0 %1559 }
0x1dcc   :  { %v1562_v15 = vadd.f32 %v1560_v20, %v1552_v40 }
0x1dce   :  { %2237 = vtanh.f32 %v1562_v15 }
0x1ddb   :  { %v2238_v4 = vpop.eup %2237 }
0x1ddc   :  { %1565 = vrot.lane.b32.xlu1 %v2238_v4, %s2335_s25 }
0x1e4e   :  { %v1566_v63 = vpop.permute.xlu1 %1565 }
0x1e4f   :  { %v1568_v49 = vmul.f32 %v1566_v63, %v1551_v43  ;;  %v1733_v63 = vld [vmem:[#allocation9 + $0x1] ss:$0 sm:$0xff] }
0x1e51   :  { %v1571_v19 = vpack.c.bf16 %v1568_v49, %v1568_v49  ;;  %v3235_v16 = vsel %vm75_vm3, %v3147_v36, %v1568_v49  ;;  %v3240_v26 = vsel %vm75_vm3, %v1568_v49, %v3147_v36 }
0x1e52   :  { %v1722_v24 = vpack.c.bf16 %v3225_v41, %v3235_v16  ;;  %v1723_v6 = vpack.c.bf16 %v3240_v26, %v3230_v13 }
0x1e53   :  { %2044 = vmatmul.mubr.msk.bf16.vlgmr.msra.gmra.mxu1 %vm479_vm2, %v1571_v19 }
0x1e54   :  { %2075 = vmatpush3.bf16.msra.mxu1 %v2149_v50 }
0x1e55   :  { %2076 = vmatprep.subr.bf16.mxu1 %v2150_v55 }
0x1e58   :  { %2077 = vmatpush3.bf16.msra.mxu1 %v2150_v55 }
0x1e59   :  { %2078 = vmatprep.subr.bf16.mxu1 %v2151_v5 }
0x1e5c   :  { %2079 = vmatpush3.bf16.msra.mxu1 %v2151_v5 }
0x1e5d   :  { %2080 = vmatprep.subr.bf16.mxu1 %v2152_v30 }
0x1e60   :  { %2081 = vmatpush3.bf16.msra.mxu1 %v2152_v30 }
0x1f13   :  { %v1609_v33 = vpop.f32.mrf.mxu1 }
0x1f14   :  { %v1616_v47 = vadd.f32 %v1609_v33, %v1569_v44 }
0x1f15   :  { %v1611_v37 = vpop.f32.mrf.mxu1 }
0x1f16   :  { %v1617_v36 = vadd.f32 %v1611_v37, %v1570_v61 }
0x1f17   :  { %v1613_v28 = vpop.f32.mrf.mxu1 }
0x1f18   :  { %2239 = vtanh.f32 %v1617_v36 }
0x1f19   :  { %v1614_v38 = vpop.f32.mrf.mxu1  ;;  %2241 = vtanh.f32 %v1616_v47 }
0x1f25   :  { %v2240_v10 = vpop.eup %2239 }
0x1f26   :  { %1626 = vrot.lane.b32.xlu0 %v2240_v10, %s2335_s25  ;;  %v2242_v3 = vpop.eup %2241  ;;  %v1621_v14 = vmul.f32 0.5, %v2240_v10 }
0x1f27   :  { %v1620_v57 = vmul.f32 0.5, %v2242_v3 }
0x1f28   :  { %v1623_v61 = vadd.f32 0.5, %v1621_v14 }
0x1f29   :  { %v1622_v9 = vadd.f32 0.5, %v1620_v57 }
0x1f2b   :  { %v1624_v23 = vmul.f32 %v1622_v9, %v1562_v15 }
0x1f98   :  { %v1627_v7 = vpop.permute.xlu0 %1626 }
0x1f99   :  { %v1629_v51 = vmul.f32 %v1627_v7, %v1622_v9 }
0x1f9b   :  { %1631 = vrot.lane.b32.xlu1 %v1629_v51, %s2335_s25 }
0x200d   :  { %v1632_v44 = vpop.permute.xlu1 %1631 }
0x200e   :  { %v1634_v11 = vadd.f32 %v1632_v44, %v1624_v23 }
0x2010   :  { %2243 = vtanh.f32 %v1634_v11 }
0x201d   :  { %v2244_v1 = vpop.eup %2243 }
0x201e   :  { %1637 = vrot.lane.b32.xlu0 %v2244_v1, %s2335_s25 }
0x2090   :  { %v1638_v60 = vpop.permute.xlu0 %1637 }
0x2091   :  { %v1640_v39 = vmul.f32 %v1638_v60, %v1623_v61  ;;  %v1851_v60 = vld [vmem:[#allocation9 + $0x2] ss:$0 sm:$0xff] }
0x2093   :  { %v1643_v46 = vpack.c.bf16 %v1640_v39, %v1640_v39  ;;  %v1714_v54 = vsel %vm75_vm3, %v3120_v62, %v1640_v39  ;;  %v1719_v40 = vsel %vm75_vm3, %v1640_v39, %v3120_v62  ;;  %v2153_v62 = vld [vmem:[#allocation7 + $0x110] ss:$8 sps:$4 sm:$0xff]  }
0x2094   :  { %2090 = vmatprep.subr.bf16.mxu0 %v2153_v62 }
0x2095   :  { %2045 = vmatmul.mubr.msk.bf16.vlgmr.msra.gmra.mxu0 %vm479_vm2, %v1643_v46 }
0x2096   :  { %2091 = vmatpush3.bf16.msra.mxu0 %v2153_v62 }
0x2097   :  { %2092 = vmatprep.subr.bf16.mxu0 %v2154_v8 }
0x209a   :  { %2093 = vmatpush3.bf16.msra.mxu0 %v2154_v8 }
0x2155   :  { %v1681_v52 = vpop.f32.mrf.mxu0 }
0x2156   :  { %v1688_v42 = vadd.f32 %v1681_v52, %v1641_v2 }
0x2157   :  { %v1683_v27 = vpop.f32.mrf.mxu0 }
0x2158   :  { %v1689_v17 = vadd.f32 %v1683_v27, %v1642_v59 }
0x2159   :  { %v1685_v18 = vpop.f32.mrf.mxu0 }
0x215a   :  { %2245 = vtanh.f32 %v1689_v17 }
0x215b   :  { %v1686_v22 = vpop.f32.mrf.mxu0  ;;  %2247 = vtanh.f32 %v1688_v42 }
0x2167   :  { %v2246_v25 = vpop.eup %2245 }
0x2168   :  { %1698 = vrot.lane.b32.xlu1 %v2246_v25, %s2335_s25  ;;  %v2248_v21 = vpop.eup %2247  ;;  %v1693_v35 = vmul.f32 0.5, %v2246_v25 }
0x2169   :  { %v1692_v53 = vmul.f32 0.5, %v2248_v21 }
0x216a   :  { %v1695_v34 = vadd.f32 0.5, %v1693_v35 }
0x216b   :  { %v1694_v31 = vadd.f32 0.5, %v1692_v53 }
0x216d   :  { %v1696_v0 = vmul.f32 %v1694_v31, %v1634_v11 }
0x21da   :  { %v1699_v29 = vpop.permute.xlu1 %1698 }
0x21db   :  { %v1701_v56 = vmul.f32 %v1699_v29, %v1694_v31 }
0x21dd   :  { %1703 = vrot.lane.b32.xlu0 %v1701_v56, %s2335_s25 }
0x224f   :  { %v1704_v2 = vpop.permute.xlu0 %1703 }
0x2250   :  { %v1706_v59 = vadd.f32 %v1704_v2, %v1696_v0 }
0x2252   :  { %2249 = vtanh.f32 %v1706_v59 }
0x225f   :  { %v2250_v32 = vpop.eup %2249 }
0x2260   :  { %1709 = vrot.lane.b32.xlu1 %v2250_v32, %s2335_s25 }
0x22d2   :  { %v1710_v12 = vpop.permute.xlu1 %1709 }
0x22d3   :  { %v1712_v58 = vmul.f32 %v1710_v12, %v1695_v34 }
0x22d5   :  { %v1713_v20 = vsel %vm75_vm3, %v3093_v45, %v1712_v58  ;;  %v1720_v15 = vsel %vm75_vm3, %v1712_v58, %v3093_v45 }
0x22d6   :  { %v1721_v4 = vpack.c.bf16 %v1714_v54, %v1713_v20  ;;  %v1724_v48 = vpack.c.bf16 %v1720_v15, %v1719_v40 }
0x22d8   :  { %2082 = vmatprep.mubr.msk.bf16.mxu1 %vm479_vm2, %v1721_v4 }
0x22d9   :  { %2083 = vmatmul.mubr.msk.bf16.vlgmr.msra.gmra.mxu1 %vm479_vm2, %v1722_v24 }
0x22da   :  { %2086 = vmatprep.mubr.msk.bf16.mxu1 %vm479_vm2, %v1723_v6 }
0x22e1   :  { %2087 = vmatmul.mubr.msk.bf16.gmra.mxu1 %vm479_vm2, %v1724_v48 }
0x2399   :  { %v2084_v45 = vpop.f32.mrf.mxu1 }
0x239a   :  { %v1813_v16 = vadd.f32 %v2084_v45, %v1733_v63 }
0x239b   :  { %v1804_v43 = vpop.f32.mrf.mxu1 }
0x239c   :  { %v1805_v41 = vadd.f32 %v1804_v43, %v1733_v63  ;;  %v1837_v37 = vmax.f32 %v1813_v16, 0.0 }
0x239d   :  { %v2085_v49 = vpop.f32.mrf.mxu1 }
0x239e   :  { %v1816_v19 = vadd.f32 %v2085_v49, %v1733_v63  ;;  %v1835_v6 = vmax.f32 %v1805_v41, 0.0 }
0x239f   :  { %v1807_v24 = vpop.f32.mrf.mxu1 }
0x23a0   :  { %v1808_v33 = vadd.f32 %v1807_v24, %v1733_v63  ;;  %v1838_v13 = vmax.f32 %v1816_v19, 0.0 }
0x23a1   :  { %v2088_v26 = vpop.f32.mrf.mxu1 }
0x23a2   :  { %v1836_v47 = vmax.f32 %v1808_v33, 0.0  ;;  %v1844_v38 = vpack.c.bf16 %v1838_v13, %v1837_v37  ;;  %v1829_v9 = vadd.f32 %v2088_v26, %v1733_v63 }
0x23a3   :  { %v1820_v36 = vpop.f32.mrf.mxu1 }
0x23a4   :  { %v1843_v28 = vpack.c.bf16 %v1836_v47, %v1835_v6  ;;  %v1821_v3 = vadd.f32 %v1820_v36, %v1733_v63  ;;  %v1841_v1 = vmax.f32 %v1829_v9, 0.0 }
0x23a5   :  { %v2089_v10 = vpop.f32.mrf.mxu1 }
0x23a6   :  { %v1832_v57 = vadd.f32 %v2089_v10, %v1733_v63  ;;  %2094 = vmatprep.mubr.msk.bf16.mxu0 %vm1864_vm4, %v1843_v28  ;;  %v1839_v44 = vmax.f32 %v1821_v3, 0.0 }
0x23a7   :  { %v1823_v7 = vpop.f32.mrf.mxu1  ;;  %2095 = vmatmul.mubr.msk.bf16.vlgmr.msra.gmra.mxu0 %vm1864_vm4, %v1844_v38 }
0x23a8   :  { %v1824_v51 = vadd.f32 %v1823_v7, %v1733_v63  ;;  %v1842_v23 = vmax.f32 %v1832_v57, 0.0 }
0x23aa   :  { %v1840_v11 = vmax.f32 %v1824_v51, 0.0  ;;  %v1846_v61 = vpack.c.bf16 %v1842_v23, %v1841_v1 }
0x23ac   :  { %v1845_v14 = vpack.c.bf16 %v1840_v11, %v1839_v44 }
0x23ae   :  { %2098 = vmatprep.mubr.msk.bf16.mxu0 %vm1864_vm4, %v1845_v14 }
0x23af   :  { %2099 = vmatmul.mubr.msk.bf16.gmra.mxu0 %vm1864_vm4, %v1846_v61 }
0x2467   :  { %v2096_v39 = vpop.f32.mrf.mxu0 }
0x2468   :  { %v1920_v46 = vadd.f32 %v2096_v39, %v1851_v60 }
0x2469   :  { %v1911_v52 = vpop.f32.mrf.mxu0 }
0x246a   :  { %1944 = vst [vmem:[%s3328_s4 + $0x10] sm:$0xff] %v1920_v46  ;;  %v1912_v42 = vadd.f32 %v1911_v52, %v1851_v60 }
0x246b   :  { %v2097_v27 = vpop.f32.mrf.mxu0 }
0x246c   :  { %1942 = vst [vmem:[%s3328_s4] sm:$0xff] %v1912_v42  ;;  %v1923_v17 = vadd.f32 %v2097_v27, %v1851_v60 }
0x246d   :  { %v1914_v18 = vpop.f32.mrf.mxu0 }
0x246e   :  { %1945 = vst [vmem:[%s3328_s4 + $0x18] sm:$0xff] %v1923_v17  ;;  %v1915_v22 = vadd.f32 %v1914_v18, %v1851_v60 }
0x246f   :  { %v2100_v25 = vpop.f32.mrf.mxu0 }
0x2470   :  { %1943 = vst [vmem:[%s3328_s4 + $0x8] sm:$0xff] %v1915_v22  ;;  %v1936_v21 = vadd.f32 %v2100_v25, %v1851_v60 }
0x2471   :  { %v1927_v53 = vpop.f32.mrf.mxu0 }
0x2472   :  { %1948 = vst [vmem:[%s3328_s4 + $0x30] sm:$0xff] %v1936_v21  ;;  %v1928_v31 = vadd.f32 %v1927_v53, %v1851_v60 }
0x2473   :  { %v2101_v29 = vpop.f32.mrf.mxu0 }
0x2474   :  { %1946 = vst [vmem:[%s3328_s4 + $0x20] sm:$0xff] %v1928_v31  ;;  %v1939_v56 = vadd.f32 %v2101_v29, %v1851_v60 }
0x2475   :  { %v1930_v50 = vpop.f32.mrf.mxu0 }
0x2476   :  { %1949 = vst [vmem:[%s3328_s4 + $0x38] sm:$0xff] %v1939_v56  ;;  %v1931_v55 = vadd.f32 %v1930_v50, %v1851_v60 }
0x2478   :  { %1947 = vst [vmem:[%s3328_s4 + $0x28] sm:$0xff] %v1931_v55 }
0x2479   :  { %1954 = vsyncpa [#allocation4], 1 }
0x247a   :  { %1955 = vsyncpa [#allocation8], 1 }
0x247b   :  { %1956 = vsyncpa [#allocation5], 1 }

</bundles_post_ra>
